<compile_context>
chip_gen: v7x
topology: tpu7x:2x2x1
jax: 0.10.0
libtpu: 0.0.40
codegen_flags: <defaults>
</compile_context>

<pallas_src>
import functools

import jax
import jax.numpy as jnp
import numpy as np
from jax.experimental import pallas as pl
from jax.experimental.pallas import tpu as pltpu


def _round_up(x, m):
    return (x + m - 1) // m * m


def _pad2(a, rows, cols):
    return jnp.pad(a, ((0, rows - a.shape[0]), (0, cols - a.shape[1])))


def _vmem_target_bytes():
    """Generation-aware VMEM cap (leave headroom for XLA's own scoped VMEM)."""
    cap = 64 * 1024 * 1024  # conservative default (v7x per-TC VMEM)
    try:
        info = pltpu.get_tpu_info()
        c = getattr(info, "vmem_capacity_bytes", None)
        if c:
            cap = int(c)
    except Exception:
        pass
    return int(cap * 0.75)


# ----------------------------------------------------------------------------
# Kernel A: GRU cell + dot attention + concat Linear + tanh.  Runs once (no grid).
# ----------------------------------------------------------------------------
def _gru_attn_concat_kernel(
    emb_ref,      # (Bp, Hp)     f32   embedded input token
    h_ref,        # (Bp, Hp)     f32   previous GRU hidden state
    enc_ref,      # (Bp, Lp, Hp) bf16  encoder outputs (batch-major), for context
    enc_t_ref,    # (Bp, Hp, Lp) bf16  pre-transposed encoder outputs, for scores
    w_rz_ref,     # (2Hp, 2Hp)   bf16  [x;h] @ [[W_ir,W_iz],[W_hr,W_hz]]
    w_in_ref,     # (Hp, Hp)     bf16
    w_hn_ref,     # (Hp, Hp)     bf16
    b_rz_ref,     # (1, 2Hp)     f32   [b_ir+b_hr | b_iz+b_hz]
    b_in_ref,     # (1, Hp)      f32
    b_hn_ref,     # (1, Hp)      f32
    w_cat_ref,    # (2Hp, Hp)    bf16  concat Linear weight (rows = [rnn_out | context])
    b_cat_ref,    # (1, Hp)      f32
    hid_ref,      # (Bp, Hp)     f32   OUT: new hidden state
    cat_ref,      # (Bp, Hp)     bf16  OUT: tanh(concat Linear) output
    *, Hp, L, Lp,
):
    x = emb_ref[...]
    h = h_ref[...]

    # --- GRU cell (PyTorch semantics), no zero-block padding in the weights ---
    xh = jnp.concatenate([x, h], axis=1).astype(jnp.bfloat16)          # (Bp, 2Hp)
    g_rz = (jnp.dot(xh, w_rz_ref[...], preferred_element_type=jnp.float32)
            + b_rz_ref[...])                                           # (Bp, 2Hp)
    r = jax.nn.sigmoid(g_rz[:, :Hp])
    z = jax.nn.sigmoid(g_rz[:, Hp:])
    i_n = (jnp.dot(x.astype(jnp.bfloat16), w_in_ref[...],
                   preferred_element_type=jnp.float32) + b_in_ref[...])
    h_n = (jnp.dot(h.astype(jnp.bfloat16), w_hn_ref[...],
                   preferred_element_type=jnp.float32) + b_hn_ref[...])
    n = jnp.tanh(i_n + r * h_n)
    h_new = (1.0 - z) * n + z * h                                      # (Bp, Hp)
    hid_ref[...] = h_new

    # --- dot attention: scores against pre-transposed enc (MXU-natural layout) ---
    q = h_new[:, None, :].astype(jnp.bfloat16)                         # (Bp, 1, Hp)
    s = jnp.einsum("bqh,bhl->bql", q, enc_t_ref[...],
                   preferred_element_type=jnp.float32)                 # (Bp, 1, Lp)
    if Lp > L:  # mask padded encoder positions (static at trace time; f32 masking)
        valid = jax.lax.broadcasted_iota(jnp.int32, s.shape, 2) < L
        s = jnp.where(valid, s, -1e30)
    m = jnp.max(s, axis=-1, keepdims=True)
    e = jnp.exp(s - m)
    attn = e / jnp.sum(e, axis=-1, keepdims=True)                      # exact divide
    ctx = jnp.einsum("bql,blh->bqh", attn.astype(jnp.bfloat16), enc_ref[...],
                     preferred_element_type=jnp.float32)               # (Bp, 1, Hp)
    context = ctx[:, 0, :]                                             # (Bp, Hp)

    # --- concat Linear + tanh (single MXU push over K = 2Hp) ---
    hc = jnp.concatenate([h_new, context], axis=1).astype(jnp.bfloat16)
    cat = jnp.tanh(
        jnp.dot(hc, w_cat_ref[...], preferred_element_type=jnp.float32)
        + b_cat_ref[...])                                              # (Bp, Hp)
    cat_ref[...] = cat.astype(jnp.bfloat16)


# ----------------------------------------------------------------------------
# Kernel B: out-projection, streamed over V tiles (parallel grid axis).
# ----------------------------------------------------------------------------
def _out_proj_kernel(cat_ref, w_out_ref, b_out_ref, logits_ref):
    logits_ref[...] = (
        jnp.dot(cat_ref[...], w_out_ref[...], preferred_element_type=jnp.float32)
        + b_out_ref[...])


# ----------------------------------------------------------------------------
# One-time parameter packing: split / pad / cast weights.
# ----------------------------------------------------------------------------
def prepare_params(params, batch_size, max_src_len):
    H = params["w_ih"].shape[0]
    V = params["w_out"].shape[1]
    Bp = _round_up(batch_size, 8)
    Hp = _round_up(H, 128)
    Lp = _round_up(max_src_len, 128)
    TV = min(2048, _round_up(V, 128))
    Vp = _round_up(V, TV)

    w_ih, w_hh = params["w_ih"], params["w_hh"]
    W_ir, W_iz, W_in = w_ih[:, :H], w_ih[:, H:2 * H], w_ih[:, 2 * H:]
    W_hr, W_hz, W_hn = w_hh[:, :H], w_hh[:, H:2 * H], w_hh[:, 2 * H:]

    # [x ; h] @ [[W_ir, W_iz], [W_hr, W_hz]]  (each gate block padded to Hp so
    # in-kernel slices stay 128-aligned) -- no zero blocks.
    top = jnp.concatenate([_pad2(W_ir, H, Hp), _pad2(W_iz, H, Hp)], axis=1)
    bot = jnp.concatenate([_pad2(W_hr, H, Hp), _pad2(W_hz, H, Hp)], axis=1)
    w_rz = jnp.concatenate([_pad2(top, Hp, 2 * Hp), _pad2(bot, Hp, 2 * Hp)], axis=0)

    b_ih, b_hh = params["b_ih"][0], params["b_hh"][0]
    _padv = lambda v: jnp.pad(v, (0, Hp - H))
    b_rz = jnp.concatenate([
        _padv(b_ih[:H] + b_hh[:H]),
        _padv(b_ih[H:2 * H] + b_hh[H:2 * H]),
    ])[None, :]                                                         # (1, 2Hp)
    b_in = _padv(b_ih[2 * H:])[None, :]                                 # (1, Hp)
    b_hn = _padv(b_hh[2 * H:])[None, :]                                 # (1, Hp)

    w_cat = jnp.concatenate(
        [_pad2(params["w_concat"][:H], Hp, Hp),
         _pad2(params["w_concat"][H:], Hp, Hp)], axis=0)                # (2Hp, Hp)
    b_cat = _pad2(params["b_concat"], 1, Hp)

    w_out = _pad2(params["w_out"], Hp, Vp)                              # (Hp, Vp)
    b_out = _pad2(params["b_out"], 1, Vp)

    emb = _pad2(params["embedding"], params["embedding"].shape[0], Hp)  # (Vemb, Hp)

    weights = {
        "embedding": emb.astype(jnp.bfloat16),
        "w_rz": w_rz.astype(jnp.bfloat16),
        "w_in": _pad2(W_in, Hp, Hp).astype(jnp.bfloat16),
        "w_hn": _pad2(W_hn, Hp, Hp).astype(jnp.bfloat16),
        "b_rz": b_rz.astype(jnp.float32),
        "b_in": b_in.astype(jnp.float32),
        "b_hn": b_hn.astype(jnp.float32),
        "w_cat": w_cat.astype(jnp.bfloat16),
        "b_cat": b_cat.astype(jnp.float32),
        "w_out": w_out.astype(jnp.bfloat16),
        "b_out": b_out.astype(jnp.float32),
    }
    dims = dict(B=batch_size, H=H, V=V, L=max_src_len,
                Bp=Bp, Hp=Hp, Lp=Lp, Vp=Vp, TV=TV)
    return weights, dims


def prepare_encoder_outputs(encoder_outputs, dims):
    """Hoisted out of the per-step path: transpose / pad / cast once per sequence.

    Returns (enc, enc_t): (Bp, Lp, Hp) bf16 for the context contraction and the
    pre-transposed (Bp, Hp, Lp) bf16 copy for the score contraction.
    """
    B, L, H = dims["B"], dims["L"], dims["H"]
    Bp, Lp, Hp = dims["Bp"], dims["Lp"], dims["Hp"]
    enc = jnp.transpose(encoder_outputs, (1, 0, 2))                     # (B, L, H)
    enc = jnp.pad(enc, ((0, Bp - B), (0, Lp - L), (0, Hp - H))).astype(jnp.bfloat16)
    enc_t = jnp.transpose(enc, (0, 2, 1))                               # (Bp, Hp, Lp)
    return enc, enc_t


# ----------------------------------------------------------------------------
# Build the jitted decode step (pallas_calls constructed once per shape config).
# ----------------------------------------------------------------------------
def make_decoder_step(dims):
    B, H, V = dims["B"], dims["H"], dims["V"]
    Bp, Hp, Lp, Vp, TV = dims["Bp"], dims["Hp"], dims["Lp"], dims["Vp"], dims["TV"]
    L = dims["L"]

    vmem_target = _vmem_target_bytes()
    f32b, b16b = 4, 2

    # --- kernel A: no grid, whole arrays resident once in VMEM ---
    a_bytes = (2 * Bp * Hp * f32b                       # emb, h
               + 2 * Bp * Lp * Hp * b16b                # enc, enc_t
               + (2 * Hp) * (2 * Hp) * b16b             # w_rz
               + 2 * Hp * Hp * b16b                     # w_in, w_hn
               + 4 * Hp * f32b                          # b_rz, b_in, b_hn
               + (2 * Hp) * Hp * b16b + Hp * f32b       # w_cat, b_cat
               + Bp * Hp * (f32b + b16b))               # hid, cat
    vmem_a = int(min(max(2 * a_bytes + (4 << 20), 32 << 20), vmem_target))

    kernel_a = functools.partial(_gru_attn_concat_kernel, Hp=Hp, L=L, Lp=Lp)
    pc_a = pl.pallas_call(
        kernel_a,
        out_shape=(
            jax.ShapeDtypeStruct((Bp, Hp), jnp.float32),    # new hidden
            jax.ShapeDtypeStruct((Bp, Hp), jnp.bfloat16),   # cat activation
        ),
        compiler_params=pltpu.CompilerParams(vmem_limit_bytes=vmem_a),
    )

    # --- kernel B: out-projection streamed over V tiles, parallel grid axis ---
    b_bytes = (2 * (Hp * TV * b16b + TV * f32b + Bp * TV * f32b)   # streamed tiles (x2 buffers)
               + 2 * Bp * Hp * b16b)                               # cat
    vmem_b = int(min(max(2 * b_bytes + (4 << 20), 32 << 20), vmem_target))

    pc_b = pl.pallas_call(
        _out_proj_kernel,
        out_shape=jax.ShapeDtypeStruct((Bp, Vp), jnp.float32),
        grid_spec=pltpu.PrefetchScalarGridSpec(
            num_scalar_prefetch=0,
            grid=(Vp // TV,),
            in_specs=[
                pl.BlockSpec((Bp, Hp), lambda j: (0, 0)),   # cat (tiny, re-read per tile)
                pl.BlockSpec((Hp, TV), lambda j: (0, j)),   # w_out tile
                pl.BlockSpec((1, TV), lambda j: (0, j)),    # b_out tile
            ],
            out_specs=pl.BlockSpec((Bp, TV), lambda j: (0, j)),
        ),
        compiler_params=pltpu.CompilerParams(
            dimension_semantics=("parallel",),              # V tiles independent -> megacore
            vmem_limit_bytes=vmem_b,
        ),
    )

    @jax.jit
    def step(input_step, last_hidden, enc_prepared, weights):
        enc, enc_t = enc_prepared
        # Embedding lookup (same jit / dispatch as the kernels).
        emb = weights["embedding"][input_step[0]].astype(jnp.float32)   # (B, Hp)
        emb = jnp.pad(emb, ((0, Bp - B), (0, 0)))
        h_prev = jnp.pad(last_hidden[0], ((0, Bp - B), (0, Hp - H)))

        hid, cat = pc_a(emb, h_prev, enc, enc_t,
                        weights["w_rz"], weights["w_in"], weights["w_hn"],
                        weights["b_rz"], weights["b_in"], weights["b_hn"],
                        weights["w_cat"], weights["b_cat"])

        logits = pc_b(cat, weights["w_out"], weights["b_out"])          # (Bp, Vp)

        out = jax.nn.softmax(logits[:B, :V], axis=1)                    # (B, V)
        return out, hid[:B, :H][None, :, :]                             # (1, B, H)

    return step


# ----------------------------------------------------------------------------
# Pure-JAX reference (mirrors the PyTorch forward, full f32 weights).
# ----------------------------------------------------------------------------
def reference_step(input_step, last_hidden, encoder_outputs, params):
    emb = params["embedding"][input_step[0]]       # (B, H)
    h = last_hidden[0]                             # (B, H)
    H = h.shape[1]
    gi = emb @ params["w_ih"] + params["b_ih"][0]
    gh = h @ params["w_hh"] + params["b_hh"][0]
    r = jax.nn.sigmoid(gi[:, :H] + gh[:, :H])
    z = jax.nn.sigmoid(gi[:, H:2 * H] + gh[:, H:2 * H])
    n = jnp.tanh(gi[:, 2 * H:] + r * gh[:, 2 * H:])
    h_new = (1.0 - z) * n + z * h                  # (B, H)

    scores = jnp.sum(h_new[None, :, :] * encoder_outputs, axis=2)   # (L, B)
    attn = jax.nn.softmax(scores.T, axis=1)                         # (B, L)
    enc_bmajor = jnp.transpose(encoder_outputs, (1, 0, 2))          # (B, L, H)
    context = jnp.einsum("bl,blh->bh", attn, enc_bmajor)            # (B, H)

    cat_in = jnp.concatenate([h_new, context], axis=1)
    cat_out = jnp.tanh(cat_in @ params["w_concat"] + params["b_concat"][0])
    logits = cat_out @ params["w_out"] + params["b_out"][0]
    return jax.nn.softmax(logits, axis=1), h_new[None, :, :]


# ----------------------------------------------------------------------------
# Deterministic parameter init + demo
# ----------------------------------------------------------------------------
def make_params(key, hidden_size, output_size):
    ks = jax.random.split(key, 8)
    H, V = hidden_size, output_size
    s = 0.1
    return {
        "embedding": jax.random.normal(ks[0], (V, H), jnp.float32) * s,
        "w_ih": jax.random.normal(ks[1], (H, 3 * H), jnp.float32) * s,
        "w_hh": jax.random.normal(ks[2], (H, 3 * H), jnp.float32) * s,
        "b_ih": jax.random.normal(ks[3], (1, 3 * H), jnp.float32) * s,
        "b_hh": jax.random.normal(ks[4], (1, 3 * H), jnp.float32) * s,
        "w_concat": jax.random.normal(ks[5], (2 * H, H), jnp.float32) * s,
        "b_concat": jnp.zeros((1, H), jnp.float32),
        "w_out": jax.random.normal(ks[6], (H, V), jnp.float32) * s,
        "b_out": jnp.zeros((1, V), jnp.float32),
    }


if __name__ == "__main__":
    B, H, L, V = 2, 32, 8, 64   # batch, hidden, encoder seq len, vocab/output size

    key = jax.random.PRNGKey(0)
    k_par, k_inp, k_hid, k_enc = jax.random.split(key, 4)

    params = make_params(k_par, H, V)
    input_step = jax.random.randint(k_inp, (1, B), 0, V, dtype=jnp.int32)   # (1, B)
    last_hidden = jax.random.normal(k_hid, (1, B, H), jnp.float32)          # (1, B, H)
    encoder_outputs = jax.random.normal(k_enc, (L, B, H), jnp.float32)      # (L, B, H)

    weights, dims = prepare_params(params, batch_size=B, max_src_len=L)
    enc_prepared = prepare_encoder_outputs(encoder_outputs, dims)   # hoisted out of the step
    decoder_step = make_decoder_step(dims)

    out, hidden = decoder_step(input_step, last_hidden, enc_prepared, weights)
    out = jax.block_until_ready(out)
    hidden = jax.block_until_ready(hidden)

    ref_out, ref_hidden = reference_step(input_step, last_hidden, encoder_outputs, params)
    # Tolerances re-baselined for bf16-stored weights / bf16 encoder outputs.
    np.testing.assert_allclose(np.asarray(out), np.asarray(ref_out), rtol=2e-2, atol=5e-3)
    np.testing.assert_allclose(np.asarray(hidden), np.asarray(ref_hidden), rtol=2e-2, atol=2e-2)
    assert out.shape == (B, V) and hidden.shape == (1, B, H)

    print("KERNEL_OK")
</pallas_src>

<mosaic_0001>
module attributes {stable_mosaic.version = 11 : i64} {
  func.func @_out_proj_kernel(%arg0: i32, %arg1: memref<8x128xbf16, #tpu.memory_space<vmem>>, %arg2: memref<128x128xbf16, #tpu.memory_space<vmem>>, %arg3: memref<1x128xf32, #tpu.memory_space<vmem>>, %arg4: memref<8x128xf32, #tpu.memory_space<vmem>>) attributes {dimension_semantics = [#tpu.dimension_semantics<parallel>], iteration_bounds = array<i64: 1>, scalar_prefetch = 0 : i64, scratch_operands = 0 : i64, tpu.core_type = #tpu.core_type<tc>, window_params = [{pipeline_mode = #tpu.pipeline_mode<synchronous>, transform_indices = @transform_0, window_bounds = array<i64: 8, 128>}, {transform_indices = @transform_1, window_bounds = array<i64: 128, 128>}, {transform_indices = @transform_2, window_bounds = array<i64: 1, 128>}, {transform_indices = @transform_3, window_bounds = array<i64: 8, 128>}]} {
    %c0 = arith.constant 0 : index
    %c0_0 = arith.constant 0 : index
    %0 = vector.load %arg1[%c0, %c0_0] : memref<8x128xbf16, #tpu.memory_space<vmem>>, vector<8x128xbf16>
    %c0_1 = arith.constant 0 : index
    %c0_2 = arith.constant 0 : index
    %1 = vector.load %arg2[%c0_1, %c0_2] : memref<128x128xbf16, #tpu.memory_space<vmem>>, vector<128x128xbf16>
    %cst = arith.constant dense<0.000000e+00> : vector<8x128xf32>
    %2 = tpu.matmul %0, %1, %cst {dimension_numbers = #tpu.dot_dimension_numbers<[1], [0], [0], [1], [0, 0, 1, 1], [], []>} : vector<8x128xbf16>, vector<128x128xbf16>, vector<8x128xf32> -> vector<8x128xf32>
    %c0_3 = arith.constant 0 : index
    %c0_4 = arith.constant 0 : index
    %3 = vector.load %arg3[%c0_3, %c0_4] : memref<1x128xf32, #tpu.memory_space<vmem>>, vector<1x128xf32>
    %4 = vector.broadcast %3 : vector<1x128xf32> to vector<8x128xf32>
    %5 = arith.addf %2, %4 : vector<8x128xf32>
    %c0_5 = arith.constant 0 : index
    %c0_6 = arith.constant 0 : index
    %6 = vector.load %arg4[%c0_5, %c0_6] : memref<8x128xf32, #tpu.memory_space<vmem>>, vector<8x128xf32>
    tpu.vector_store %arg4[%c0_5, %c0_6], %5 {strides = array<i32>} : memref<8x128xf32, #tpu.memory_space<vmem>>, vector<8x128xf32>,
    return
  }
  func.func @transform_0(%arg0: i32) -> (i32, i32) {
    %c0_i32 = arith.constant 0 : i32
    %c0_i32_0 = arith.constant 0 : i32
    %c0_i32_1 = arith.constant 0 : i32
    return %c0_i32, %c0_i32_0 : i32, i32
  }
  func.func @transform_1(%arg0: i32) -> (i32, i32) {
    %c0_i32 = arith.constant 0 : i32
    %c0_i32_0 = arith.constant 0 : i32
    return %c0_i32, %arg0 : i32, i32
  }
  func.func @transform_2(%arg0: i32) -> (i32, i32) {
    %c0_i32 = arith.constant 0 : i32
    %c0_i32_0 = arith.constant 0 : i32
    return %c0_i32, %arg0 : i32, i32
  }
  func.func @transform_3(%arg0: i32) -> (i32, i32) {
    %c0_i32 = arith.constant 0 : i32
    %c0_i32_0 = arith.constant 0 : i32
    return %c0_i32, %arg0 : i32, i32
  }
}

module attributes {stable_mosaic.version = 11 : i64} {
  func.func @_gru_attn_concat_kernel(%arg0: memref<8x128xf32, #tpu.memory_space<vmem>>, %arg1: memref<8x128xf32, #tpu.memory_space<vmem>>, %arg2: memref<8x128x128xbf16, #tpu.memory_space<vmem>>, %arg3: memref<8x128x128xbf16, #tpu.memory_space<vmem>>, %arg4: memref<256x256xbf16, #tpu.memory_space<vmem>>, %arg5: memref<128x128xbf16, #tpu.memory_space<vmem>>, %arg6: memref<128x128xbf16, #tpu.memory_space<vmem>>, %arg7: memref<1x256xf32, #tpu.memory_space<vmem>>, %arg8: memref<1x128xf32, #tpu.memory_space<vmem>>, %arg9: memref<1x128xf32, #tpu.memory_space<vmem>>, %arg10: memref<256x128xbf16, #tpu.memory_space<vmem>>, %arg11: memref<1x128xf32, #tpu.memory_space<vmem>>, %arg12: memref<8x128xf32, #tpu.memory_space<vmem>>, %arg13: memref<8x128xbf16, #tpu.memory_space<vmem>>) attributes {dimension_semantics = [], scalar_prefetch = 0 : i64, scratch_operands = 0 : i64, tpu.core_type = #tpu.core_type<tc>} {
    %c0 = arith.constant 0 : index
    %c0_0 = arith.constant 0 : index
    %0 = vector.load %arg0[%c0, %c0_0] : memref<8x128xf32, #tpu.memory_space<vmem>>, vector<8x128xf32>
    %c0_1 = arith.constant 0 : index
    %c0_2 = arith.constant 0 : index
    %1 = vector.load %arg1[%c0_1, %c0_2] : memref<8x128xf32, #tpu.memory_space<vmem>>, vector<8x128xf32>
    %2 = tpu.concatenate %0, %1 in 1 : vector<8x128xf32>, vector<8x128xf32> -> vector<8x256xf32>
    %3 = arith.truncf %2 : vector<8x256xf32> to vector<8x256xbf16>
    %c0_3 = arith.constant 0 : index
    %c0_4 = arith.constant 0 : index
    %4 = vector.load %arg4[%c0_3, %c0_4] : memref<256x256xbf16, #tpu.memory_space<vmem>>, vector<256x256xbf16>
    %cst = arith.constant dense<0.000000e+00> : vector<8x256xf32>
    %5 = tpu.matmul %3, %4, %cst {dimension_numbers = #tpu.dot_dimension_numbers<[1], [0], [0], [1], [0, 0, 1, 1], [], []>} : vector<8x256xbf16>, vector<256x256xbf16>, vector<8x256xf32> -> vector<8x256xf32>
    %c0_5 = arith.constant 0 : index
    %c0_6 = arith.constant 0 : index
    %6 = vector.load %arg7[%c0_5, %c0_6] : memref<1x256xf32, #tpu.memory_space<vmem>>, vector<1x256xf32>
    %7 = vector.broadcast %6 : vector<1x256xf32> to vector<8x256xf32>
    %8 = arith.addf %5, %7 : vector<8x256xf32>
    %9 = vector.extract_strided_slice %8 {offsets = [0, 0], sizes = [8, 128], strides = [1, 1]} : vector<8x256xf32> to vector<8x128xf32>
    %10 = arith.negf %9 : vector<8x128xf32>
    %11 = math.exp %10 : vector<8x128xf32>
    %cst_7 = arith.constant 1.000000e+00 : f32
    %12 = vector.broadcast %cst_7 : f32 to vector<8x128xf32>
    %13 = arith.addf %12, %11 : vector<8x128xf32>
    %14 = arith.divf %12, %13 : vector<8x128xf32>
    %15 = vector.extract_strided_slice %8 {offsets = [0, 128], sizes = [8, 128], strides = [1, 1]} : vector<8x256xf32> to vector<8x128xf32>
    %16 = arith.negf %15 : vector<8x128xf32>
    %17 = math.exp %16 : vector<8x128xf32>
    %cst_8 = arith.constant 1.000000e+00 : f32
    %18 = vector.broadcast %cst_8 : f32 to vector<8x128xf32>
    %19 = arith.addf %18, %17 : vector<8x128xf32>
    %20 = arith.divf %18, %19 : vector<8x128xf32>
    %21 = arith.truncf %0 : vector<8x128xf32> to vector<8x128xbf16>
    %c0_9 = arith.constant 0 : index
    %c0_10 = arith.constant 0 : index
    %22 = vector.load %arg5[%c0_9, %c0_10] : memref<128x128xbf16, #tpu.memory_space<vmem>>, vector<128x128xbf16>
    %cst_11 = arith.constant dense<0.000000e+00> : vector<8x128xf32>
    %23 = tpu.matmul %21, %22, %cst_11 {dimension_numbers = #tpu.dot_dimension_numbers<[1], [0], [0], [1], [0, 0, 1, 1], [], []>} : vector<8x128xbf16>, vector<128x128xbf16>, vector<8x128xf32> -> vector<8x128xf32>
    %c0_12 = arith.constant 0 : index
    %c0_13 = arith.constant 0 : index
    %24 = vector.load %arg8[%c0_12, %c0_13] : memref<1x128xf32, #tpu.memory_space<vmem>>, vector<1x128xf32>
    %25 = vector.broadcast %24 : vector<1x128xf32> to vector<8x128xf32>
    %26 = arith.addf %23, %25 : vector<8x128xf32>
    %27 = arith.truncf %1 : vector<8x128xf32> to vector<8x128xbf16>
    %c0_14 = arith.constant 0 : index
    %c0_15 = arith.constant 0 : index
    %28 = vector.load %arg6[%c0_14, %c0_15] : memref<128x128xbf16, #tpu.memory_space<vmem>>, vector<128x128xbf16>
    %cst_16 = arith.constant dense<0.000000e+00> : vector<8x128xf32>
    %29 = tpu.matmul %27, %28, %cst_16 {dimension_numbers = #tpu.dot_dimension_numbers<[1], [0], [0], [1], [0, 0, 1, 1], [], []>} : vector<8x128xbf16>, vector<128x128xbf16>, vector<8x128xf32> -> vector<8x128xf32>
    %c0_17 = arith.constant 0 : index
    %c0_18 = arith.constant 0 : index
    %30 = vector.load %arg9[%c0_17, %c0_18] : memref<1x128xf32, #tpu.memory_space<vmem>>, vector<1x128xf32>
    %31 = vector.broadcast %30 : vector<1x128xf32> to vector<8x128xf32>
    %32 = arith.addf %29, %31 : vector<8x128xf32>
    %33 = arith.mulf %14, %32 : vector<8x128xf32>
    %34 = arith.addf %26, %33 : vector<8x128xf32>
    %35 = math.tanh %34 : vector<8x128xf32>
    %cst_19 = arith.constant 1.000000e+00 : f32
    %36 = vector.broadcast %cst_19 : f32 to vector<8x128xf32>
    %37 = arith.subf %36, %20 : vector<8x128xf32>
    %38 = arith.mulf %37, %35 : vector<8x128xf32>
    %39 = arith.mulf %20, %1 : vector<8x128xf32>
    %40 = arith.addf %38, %39 : vector<8x128xf32>
    %c0_20 = arith.constant 0 : index
    %c0_21 = arith.constant 0 : index
    %41 = vector.load %arg12[%c0_20, %c0_21] : memref<8x128xf32, #tpu.memory_space<vmem>>, vector<8x128xf32>
    tpu.vector_store %arg12[%c0_20, %c0_21], %40 {strides = array<i32>} : memref<8x128xf32, #tpu.memory_space<vmem>>, vector<8x128xf32>,
    %42 = vector.shape_cast %40 : vector<8x128xf32> to vector<8x1x128xf32>
    %43 = arith.truncf %42 : vector<8x1x128xf32> to vector<8x1x128xbf16>
    %c0_22 = arith.constant 0 : index
    %c0_23 = arith.constant 0 : index
    %c0_24 = arith.constant 0 : index
    %44 = vector.load %arg3[%c0_22, %c0_23, %c0_24] : memref<8x128x128xbf16, #tpu.memory_space<vmem>>, vector<8x128x128xbf16>
    "tpu.trace_start"() <{level = 10 : i32, message = "bqh,bhl->bql"}> : () -> ()
    %cst_25 = arith.constant dense<0.000000e+00> : vector<8x1x128xf32>
    %45 = tpu.matmul %43, %44, %cst_25 {dimension_numbers = #tpu.dot_dimension_numbers<[2], [1], [1], [2], [0, 0, 0, 1, 1, 2], [0], [0]>} : vector<8x1x128xbf16>, vector<8x128x128xbf16>, vector<8x1x128xf32> -> vector<8x1x128xf32>
    "tpu.trace_stop"() : () -> ()
    %46 = tpu.iota {dimensions = array<i32: 2>} : vector<8x1x128xi32>
    %c8_i32 = arith.constant 8 : i32
    %47 = vector.broadcast %c8_i32 : i32 to vector<8x1x128xi32>
    %48 = arith.cmpi slt, %46, %47 : vector<8x1x128xi32>
    %cst_26 = arith.constant -1.000000e+30 : f32
    %49 = vector.broadcast %cst_26 : f32 to vector<8x1x128xf32>
    %50 = arith.select %48, %45, %49 : vector<8x1x128xi1>, vector<8x1x128xf32>
    %cst_27 = arith.constant dense<0xFF800000> : vector<8x1xf32>
    %51 = vector.multi_reduction <maximumf>, %50, %cst_27 [2] : vector<8x1x128xf32> to vector<8x1xf32>
    %52 = vector.shape_cast %51 : vector<8x1xf32> to vector<8x1x1xf32>
    %53 = vector.broadcast %52 : vector<8x1x1xf32> to vector<8x1x128xf32>
    %54 = arith.subf %50, %53 : vector<8x1x128xf32>
    %55 = math.exp %54 : vector<8x1x128xf32>
    %cst_28 = arith.constant dense<0.000000e+00> : vector<8x1xf32>
    %56 = vector.multi_reduction <add>, %55, %cst_28 [2] : vector<8x1x128xf32> to vector<8x1xf32>
    %57 = vector.shape_cast %56 : vector<8x1xf32> to vector<8x1x1xf32>
    %58 = vector.broadcast %57 : vector<8x1x1xf32> to vector<8x1x128xf32>
    %59 = arith.divf %55, %58 : vector<8x1x128xf32>
    %60 = arith.truncf %59 : vector<8x1x128xf32> to vector<8x1x128xbf16>
    %c0_29 = arith.constant 0 : index
    %c0_30 = arith.constant 0 : index
    %c0_31 = arith.constant 0 : index
    %61 = vector.load %arg2[%c0_29, %c0_30, %c0_31] : memref<8x128x128xbf16, #tpu.memory_space<vmem>>, vector<8x128x128xbf16>
    "tpu.trace_start"() <{level = 10 : i32, message = "bql,blh->bqh"}> : () -> ()
    %cst_32 = arith.constant dense<0.000000e+00> : vector<8x1x128xf32>
    %62 = tpu.matmul %60, %61, %cst_32 {dimension_numbers = #tpu.dot_dimension_numbers<[2], [1], [1], [2], [0, 0, 0, 1, 1, 2], [0], [0]>} : vector<8x1x128xbf16>, vector<8x128x128xbf16>, vector<8x1x128xf32> -> vector<8x1x128xf32>
    "tpu.trace_stop"() : () -> ()
    %63 = vector.shape_cast %62 : vector<8x1x128xf32> to vector<8x128xf32>
    %64 = tpu.concatenate %40, %63 in 1 : vector<8x128xf32>, vector<8x128xf32> -> vector<8x256xf32>
    %65 = arith.truncf %64 : vector<8x256xf32> to vector<8x256xbf16>
    %c0_33 = arith.constant 0 : index
    %c0_34 = arith.constant 0 : index
    %66 = vector.load %arg10[%c0_33, %c0_34] : memref<256x128xbf16, #tpu.memory_space<vmem>>, vector<256x128xbf16>
    %cst_35 = arith.constant dense<0.000000e+00> : vector<8x128xf32>
    %67 = tpu.matmul %65, %66, %cst_35 {dimension_numbers = #tpu.dot_dimension_numbers<[1], [0], [0], [1], [0, 0, 1, 1], [], []>} : vector<8x256xbf16>, vector<256x128xbf16>, vector<8x128xf32> -> vector<8x128xf32>
    %c0_36 = arith.constant 0 : index
    %c0_37 = arith.constant 0 : index
    %68 = vector.load %arg11[%c0_36, %c0_37] : memref<1x128xf32, #tpu.memory_space<vmem>>, vector<1x128xf32>
    %69 = vector.broadcast %68 : vector<1x128xf32> to vector<8x128xf32>
    %70 = arith.addf %67, %69 : vector<8x128xf32>
    %71 = math.tanh %70 : vector<8x128xf32>
    %72 = arith.truncf %71 : vector<8x128xf32> to vector<8x128xbf16>
    %c0_38 = arith.constant 0 : index
    %c0_39 = arith.constant 0 : index
    %73 = vector.load %arg13[%c0_38, %c0_39] : memref<8x128xbf16, #tpu.memory_space<vmem>>, vector<8x128xbf16>
    tpu.vector_store %arg13[%c0_38, %c0_39], %72 {strides = array<i32>} : memref<8x128xbf16, #tpu.memory_space<vmem>>, vector<8x128xbf16>,
    return
  }
}

</mosaic_0001>

<bundles_post_ra>
// kernel: step.3
= control target key start
LH: loop header
LB: loop body
LE: loop exit
PB: predicated region body
PF: predicated region fallthrough
CT: control target
= control target key end

     0   :  { %v180_v0 = vmov 0.0   ;;  %vm181_vm0 = vmmov 0   ;;  %s235_s1 = inlined_call_operand.vmem [shape: bf16[128,128], index: 1, kind: input, shape index: {}]   ;;  %s236_s0 = inlined_call_operand.vmem [shape: bf16[8,128], index: 0, kind: input, shape index: {}]   ;;  %s237_s2 = inlined_call_operand.vmem [shape: f32[1,128], index: 2, kind: input, shape index: {}]   ;;  %s238_s3 = inlined_call_operand.vmem [shape: f32[8,128], index: 3, kind: output, shape index: {}]  }
   0x1   :  { %150 = vmatprep.subr.bf16.mxu0 %v180_v0  ;;  %v172_v1 = vld [vmem:[%s235_s1] sm:$0xff]   ;;  %166 = vmatprep.mubr.msk.bf16.mxu0 %vm181_vm0, %v180_v0  ;;  %v173_v2 = vld [vmem:[%s235_s1 + $0x8] sm:$0xff]   ;;  %v174_v3 = vld [vmem:[%s235_s1 + $0x10] sm:$0xff]  }
   0x2   :  { %151 = vmatpush3.bf16.msra.mxu0 %v172_v1  ;;  %v175_v4 = vld [vmem:[%s235_s1 + $0x18] sm:$0xff]   ;;  %v176_v5 = vld [vmem:[%s235_s1 + $0x20] sm:$0xff]   ;;  %v177_v6 = vld [vmem:[%s235_s1 + $0x28] sm:$0xff]  }
   0x3   :  { %152 = vmatprep.subr.bf16.mxu0 %v180_v0  ;;  %v178_v7 = vld [vmem:[%s235_s1 + $0x30] sm:$0xff]   ;;  %v179_v8 = vld [vmem:[%s235_s1 + $0x38] sm:$0xff]   ;;  %v15_v9 = vld [vmem:[%s236_s0] sm:$0xf] }
   0x4   :  { %v132_v10 = vld [vmem:[%s237_s2] ss:$0 sm:$0xff] }
   0x6   :  { %153 = vmatpush3.bf16.msra.mxu0 %v173_v2 }
   0x7   :  { %154 = vmatprep.subr.bf16.mxu0 %v180_v0 }
   0xa   :  { %155 = vmatpush3.bf16.msra.mxu0 %v174_v3 }
   0xb   :  { %156 = vmatprep.subr.bf16.mxu0 %v180_v0 }
   0xe   :  { %157 = vmatpush3.bf16.msra.mxu0 %v175_v4 }
   0xf   :  { %158 = vmatprep.subr.bf16.mxu0 %v180_v0 }
  0x12   :  { %159 = vmatpush3.bf16.msra.mxu0 %v176_v5 }
  0x13   :  { %160 = vmatprep.subr.bf16.mxu0 %v180_v0 }
  0x16   :  { %161 = vmatpush3.bf16.msra.mxu0 %v177_v6 }
  0x17   :  { %162 = vmatprep.subr.bf16.mxu0 %v180_v0 }
  0x1a   :  { %163 = vmatpush3.bf16.msra.mxu0 %v178_v7 }
  0x1b   :  { %164 = vmatprep.subr.bf16.mxu0 %v180_v0 }
  0x1e   :  { %165 = vmatpush3.bf16.msra.mxu0 %v179_v8 }
  0x21   :  { %167 = vmatmul.mubr.bf16.vlgmr.msra.gmra.mrb[0].mxu0 %v15_v9 }
  0xf4   :  { %v121_v11 = vpop.f32.mrb[0].mxu0 }
  0xf5   :  { %v122_v12 = vadd.f32 %v132_v10, %v121_v11  ;;  %v168_v13 = vpop.f32.mrb[1].mxu0 }
  0xf6   :  { %v124_v14 = vpop.f32.mrb[2].mxu0 }
  0xf7   :  { %127 = vst [vmem:[%s238_s3] sm:$0xff] %v122_v12  ;;  %v169_v15 = vpop.f32.mrb[3].mxu0 }

// kernel: step.2
= control target key start
LH: loop header
LB: loop body
LE: loop exit
PB: predicated region body
PF: predicated region fallthrough
CT: control target
= control target key end

     0   :  { %19 = vsyncpa [#allocation3], 0  ;;  %s4305_s0 = inlined_call_operand.vmem [shape: f32[8,128], index: 0, kind: input, shape index: {}]   ;;  %s4306_s1 = inlined_call_operand.vmem [shape: f32[8,128], index: 1, kind: input, shape index: {}]   ;;  %s4307_s2 = inlined_call_operand.hbm [shape: bf16[8,128,128], index: 2, kind: input, shape index: {}]   ;;  %s4308_s3 = inlined_call_operand.hbm [shape: bf16[8,128,128], index: 3, kind: input, shape index: {}]   ;;  %s4309_s4 = inlined_call_operand.hbm [shape: bf16[256,256], index: 4, kind: input, shape index: {}]   ;;  %s4310_s5 = inlined_call_operand.vmem [shape: bf16[128,128], index: 5, kind: input, shape index: {}]   ;;  %s4311_s6 = inlined_call_operand.hbm [shape: bf16[128,128], index: 6, kind: input, shape index: {}]   ;;  %s4312_s7 = inlined_call_operand.vmem [shape: f32[1,256], index: 7, kind: input, shape index: {}]   ;;  %s4313_s8 = inlined_call_operand.vmem [shape: f32[1,128], index: 8, kind: input, shape index: {}]   ;;  %s4314_s9 = inlined_call_operand.vmem [shape: f32[1,128], index: 9, kind: input, shape index: {}]   ;;  %s4315_s10 = inlined_call_operand.hbm [shape: bf16[256,128], index: 10, kind: input, shape index: {}]   ;;  %s4316_s11 = inlined_call_operand.vmem [shape: f32[1,128], index: 11, kind: input, shape index: {}]   ;;  %s4317_s12 = inlined_call_operand.vmem [shape: f32[8,128], index: 12, kind: output, shape index: {0}]   ;;  %s4318_s13 = inlined_call_operand.vmem [shape: bf16[8,128], index: 13, kind: output, shape index: {1}]  }
   0x1   :  { %20 = vsyncpa [#allocation5], 0 }
   0x2   :  { %21 = vsyncpa [#allocation8], 0  ;;  %s3784_s25 = smov [#allocation4]   ;;  %s3785_s27 = smov [#allocation7]  }
   0x3   :  { %s43_s26 = sshll.u32 %s3784_s25, 4  ;;  %s69_s28 = sshll.u32 %s3785_s27, 4  ;;  %s44_s26 = int_to_ptr.vmem [resolvable:$true] %s43_s26  ;;  %s3866_s28 = int_to_ptr.vmem [resolvable:$true] %s69_s28 }
   0x4   :  { %s3668_s14 = scalar_lea.hbm %s4308_s3, 8192 }
   0x5   :  { %p3669_p0 = scmp.ne.s32.totalorder %s4308_s3, %s3668_s14  ;;  %p3672_p1 = scmp.lt.u32.totalorder %s3668_s14, %s4308_s3 }
   0x7   :  { %p3674_p2 = pnand %p3672_p1, %p3669_p0 }
   0x9   :  { %3677 = shalt.err (!%p3674_p2)
}
   0xa   :  { %s3678_s19 = scalar_lea.vmem %s44_s26, 8192  ;;  %p3683_p4 = scmp.lt.s32.totalorder %s44_s26, %s44_s26 }
   0xb   :  { %p3679_p3 = scmp.ne.s32.totalorder %s44_s26, %s3678_s19  ;;  %p3684_p5 = scmp.lt.s32.totalorder %s3678_s19, %s3678_s19 }
   0xd   :  { %p3685_p6 = por %p3684_p5, %p3683_p4 }
   0xf   :  { %p3686_p7 = pnand %p3685_p6, %p3679_p3 }
  0x11   :  { %3689 = shalt.err (!%p3686_p7)
}
  0x12   :  { %s3786_s20 = smov 64   ;;  %s3787_s21 = smov 4  }
  0x13   :  { %49 = dma.hbm_to_vmem [thread:$0]  %s4308_s3, 8192, %s44_s26, [#allocation5], %s3786_s20, %s3786_s20, %s3787_s21  }
  0x14   :  { %s3690_s27 = scalar_lea.hbm %s4311_s6, 1024 }
  0x15   :  { %p3691_p8 = scmp.ne.s32.totalorder %s4311_s6, %s3690_s27  ;;  %p3694_p9 = scmp.lt.u32.totalorder %s3690_s27, %s4311_s6 }
  0x17   :  { %p3696_p10 = pnand %p3694_p9, %p3691_p8 }
  0x19   :  { %3699 = shalt.err (!%p3696_p10)
}
  0x1a   :  { %s3700_s16 = scalar_lea.vmem %s3866_s28, 1024  ;;  %p3705_p12 = scmp.lt.s32.totalorder %s3866_s28, %s3866_s28 }
  0x1b   :  { %p3701_p11 = scmp.ne.s32.totalorder %s3866_s28, %s3700_s16  ;;  %p3706_p13 = scmp.lt.s32.totalorder %s3700_s16, %s3700_s16 }
  0x1d   :  { %p3707_p0 = por %p3706_p13, %p3705_p12 }
  0x1f   :  { %p3708_p1 = pnand %p3707_p0, %p3701_p11 }
  0x21   :  { %3711 = shalt.err (!%p3708_p1)
}
  0x22   :  { %75 = dma.hbm_to_vmem [thread:$0]  %s4311_s6, 1024, %s3866_s28, [#allocation8], %s3786_s20, %s3786_s20, %s3787_s21  }
  0x23   :  { %s3788_s17 = smov [#allocation2]   ;;  %s3789_s19 = smov [#allocation6]  }
  0x24   :  { %s31_s18 = sshll.u32 %s3788_s17, 4  ;;  %s55_s22 = sshll.u32 %s3789_s19, 4  ;;  %s32_s18 = int_to_ptr.vmem [resolvable:$true] %s31_s18  ;;  %s3903_s22 = int_to_ptr.vmem [resolvable:$true] %s55_s22 }
  0x25   :  { %s3712_s25 = scalar_lea.hbm %s4307_s2, 8192 }
  0x26   :  { %p3713_p2 = scmp.ne.s32.totalorder %s4307_s2, %s3712_s25  ;;  %p3716_p3 = scmp.lt.u32.totalorder %s3712_s25, %s4307_s2 }
  0x28   :  { %p3718_p4 = pnand %p3716_p3, %p3713_p2 }
  0x2a   :  { %3721 = shalt.err (!%p3718_p4)
}
  0x2b   :  { %s3722_s6 = scalar_lea.vmem %s32_s18, 8192  ;;  %p3727_p6 = scmp.lt.s32.totalorder %s32_s18, %s32_s18 }
  0x2c   :  { %p3723_p5 = scmp.ne.s32.totalorder %s32_s18, %s3722_s6  ;;  %p3728_p7 = scmp.lt.s32.totalorder %s3722_s6, %s3722_s6 }
  0x2e   :  { %p3729_p8 = por %p3728_p7, %p3727_p6 }
  0x30   :  { %p3730_p9 = pnand %p3729_p8, %p3723_p5 }
  0x32   :  { %3733 = shalt.err (!%p3730_p9)
}
  0x33   :  { %37 = dma.hbm_to_vmem [thread:$0]  %s4307_s2, 8192, %s32_s18, [#allocation3], %s3786_s20, %s3786_s20, %s3787_s21  }
  0x34   :  { %s3734_s26 = scalar_lea.hbm %s4309_s4, 4096 }
  0x35   :  { %p3735_p10 = scmp.ne.s32.totalorder %s4309_s4, %s3734_s26  ;;  %p3738_p11 = scmp.lt.u32.totalorder %s3734_s26, %s4309_s4 }
  0x37   :  { %p3740_p12 = pnand %p3738_p11, %p3735_p10 }
  0x39   :  { %3743 = shalt.err (!%p3740_p12)
}
  0x3a   :  { %s3744_s25 = scalar_lea.vmem %s3903_s22, 4096  ;;  %p3749_p0 = scmp.lt.s32.totalorder %s3903_s22, %s3903_s22 }
  0x3b   :  { %p3745_p13 = scmp.ne.s32.totalorder %s3903_s22, %s3744_s25  ;;  %p3750_p1 = scmp.lt.s32.totalorder %s3744_s25, %s3744_s25 }
  0x3d   :  { %p3751_p2 = por %p3750_p1, %p3749_p0 }
  0x3f   :  { %p3752_p3 = pnand %p3751_p2, %p3745_p13 }
  0x41   :  { %3755 = shalt.err (!%p3752_p3)
}
  0x42   :  { %s3790_s2 = smov 128   ;;  %s3791_s18 = smov 8  }
  0x43   :  { %61 = dma.hbm_to_vmem [thread:$0]  %s4309_s4, 4096, %s3903_s22, [#allocation5], %s3790_s2, %s3790_s2, %s3791_s18  }
  0x44   :  { %s3792_s30 = smov [#allocation9]   ;;  %s3756_s15 = scalar_lea.hbm %s4315_s10, 2048 }
  0x45   :  { %s87_s14 = sshll.u32 %s3792_s30, 4  ;;  %p3757_p4 = scmp.ne.s32.totalorder %s4315_s10, %s3756_s15  ;;  %s88_s14 = int_to_ptr.vmem [resolvable:$true] %s87_s14 }
  0x46   :  { %p3760_p5 = scmp.lt.u32.totalorder %s3756_s15, %s4315_s10 }
  0x48   :  { %p3762_p6 = pnand %p3760_p5, %p3757_p4 }
  0x4a   :  { %3765 = shalt.err (!%p3762_p6)
}
  0x4b   :  { %s3766_s19 = scalar_lea.vmem %s88_s14, 2048  ;;  %p3771_p8 = scmp.lt.s32.totalorder %s88_s14, %s88_s14 }
  0x4c   :  { %p3767_p7 = scmp.ne.s32.totalorder %s88_s14, %s3766_s19  ;;  %p3772_p9 = scmp.lt.s32.totalorder %s3766_s19, %s3766_s19 }
  0x4e   :  { %p3773_p10 = por %p3772_p9, %p3771_p8 }
  0x50   :  { %p3774_p11 = pnand %p3773_p10, %p3767_p7 }
  0x52   :  { %3777 = shalt.err (!%p3774_p11)
}
  0x53   :  { %93 = dma.hbm_to_vmem [thread:$0]  %s4315_s10, 2048, %s88_s14, [#allocation8], %s3786_s20, %s3786_s20, %s3787_s21  }
  0x54   :  { %3778 = dma.done.wait [#allocation3], 8192  }
  0x55   :  { %3779 = vsyncadd [#allocation3], 4294959104 }
  0x56   :  { %3780 = dma.done.wait [#allocation5], 12288  }
  0x57   :  { %3781 = vsyncadd [#allocation5], 4294955008 }
  0x58   :  { %3782 = dma.done.wait [#allocation8], 3072  }
  0x59   :  { %3783 = vsyncadd [#allocation8], 4294964224  ;;  %v3793_v0 = vmov 0.0   ;;  %vm3794_vm0 = vmmov 0   ;;  %v3415_v1 = vld [vmem:[#allocation6 + $0x4] ss:$8 sps:$4 sm:$0xff]  }
  0x5a   :  { %3043 = vmatprep.subr.bf16.mxu1 %v3793_v0  ;;  %3059 = vmatprep.mubr.msk.bf16.mxu1 %vm3794_vm0, %v3793_v0  ;;  %v3417_v2 = vld [vmem:[#allocation6] ss:$8 sps:$4 sm:$0xff]   ;;  %v3418_v3 = vld [vmem:[#allocation6 + $0x14] ss:$8 sps:$4 sm:$0xff]   ;;  %v3420_v4 = vld [vmem:[#allocation6 + $0x10] ss:$8 sps:$4 sm:$0xff]  }
  0x5b   :  { %320 = vmatprep.subr.bf16.mxu0 %v3415_v1  ;;  %v3421_v5 = vld [vmem:[#allocation6 + $0x24] ss:$8 sps:$4 sm:$0xff]   ;;  %v3423_v6 = vld [vmem:[#allocation6 + $0x20] ss:$8 sps:$4 sm:$0xff]   ;;  %v3424_v7 = vld [vmem:[#allocation6 + $0x34] ss:$8 sps:$4 sm:$0xff]  }
  0x5c   :  { %321 = vmatpush1.bf16.msra.mxu0 %v3417_v2  ;;  %v3435_v8 = vld [vmem:[%s4310_s5] sm:$0xff]   ;;  %v3426_v9 = vld [vmem:[#allocation6 + $0x30] ss:$8 sps:$4 sm:$0xff]   ;;  %v3439_v11 = vld [vmem:[%s4310_s5 + $0x8] sm:$0xff]   ;;  %vm1512_vm2 = vcmask 1040384   ;;  %vm2450_vm3 = vcmask 1041409  }
  0x5d   :  { %322 = vmatprep.subr.bf16.mxu0 %v3418_v3  ;;  %3044 = vmatpush3.bf16.msra.mxu1 %v3435_v8  ;;  %v3427_v10 = vld [vmem:[#allocation6 + $0x44] ss:$8 sps:$4 sm:$0xff]   ;;  %v3429_v12 = vld [vmem:[#allocation6 + $0x40] ss:$8 sps:$4 sm:$0xff]   ;;  %v3443_v13 = vld [vmem:[%s4310_s5 + $0x10] sm:$0xff]   ;;  %vm2453_vm4 = vcmask 1042434  }
  0x5e   :  { %3045 = vmatprep.subr.bf16.mxu1 %v3793_v0  ;;  %v3430_v14 = vld [vmem:[#allocation6 + $0x54] ss:$8 sps:$4 sm:$0xff]   ;;  %v3432_v15 = vld [vmem:[#allocation6 + $0x50] ss:$8 sps:$4 sm:$0xff]   ;;  %v3433_v17 = vld [vmem:[#allocation6 + $0x64] ss:$8 sps:$4 sm:$0xff]  }
  0x5f   :  { %v3447_v16 = vld [vmem:[%s4310_s5 + $0x18] sm:$0xff]   ;;  %v3436_v18 = vld [vmem:[#allocation6 + $0x60] ss:$8 sps:$4 sm:$0xff]   ;;  %v3441_v23 = vld [vmem:[#allocation6 + $0x84] ss:$8 sps:$4 sm:$0xff]   ;;  %vm2456_vm5 = vcmask 1043459  }
  0x60   :  { %323 = vmatpush1.bf16.msra.mxu0 %v3420_v4  ;;  %v3451_v19 = vld [vmem:[%s4310_s5 + $0x20] sm:$0xff]   ;;  %v3437_v20 = vld [vmem:[#allocation6 + $0x74] ss:$8 sps:$4 sm:$0xff]   ;;  %v3440_v21 = vld [vmem:[#allocation6 + $0x70] ss:$8 sps:$4 sm:$0xff]   ;;  %vm2459_vm6 = vcmask 1044484  }
  0x61   :  { %324 = vmatprep.subr.bf16.mxu0 %v3421_v5  ;;  %3046 = vmatpush3.bf16.msra.mxu1 %v3439_v11  ;;  %v3455_v22 = vld [vmem:[%s4310_s5 + $0x28] sm:$0xff]   ;;  %v3459_v25 = vld [vmem:[%s4310_s5 + $0x30] sm:$0xff]   ;;  %v3984_v26 = vld [vmem:[%s4306_s1] sm:$0xff]  ;;  %vm2462_vm7 = vcmask 1045509   ;;  %vm2465_vm8 = vcmask 1046534   ;;  %vm2468_vm9 = vcmask 1047559  }
  0x62   :  { %3047 = vmatprep.subr.bf16.mxu1 %v3793_v0  ;;  %v3444_v24 = vld [vmem:[#allocation6 + $0x80] ss:$8 sps:$4 sm:$0xff]   ;;  %v3445_v27 = vld [vmem:[#allocation6 + $0x94] ss:$8 sps:$4 sm:$0xff]   ;;  %v3989_v28 = vpack.c.bf16 %v3984_v26, %v3984_v26  ;;  %v3448_v29 = vld [vmem:[#allocation6 + $0x90] ss:$8 sps:$4 sm:$0xff]  }
  0x63   :  { %v3463_v30 = vld [vmem:[%s4310_s5 + $0x38] sm:$0xff]   ;;  %v112_v31 = vld [vmem:[%s4305_s0] sm:$0xff]  ;;  %v3471_v38 = vld [vmem:[#allocation7 + $0x8] sm:$0xff]  }
  0x64   :  { %325 = vmatpush1.bf16.msra.mxu0 %v3423_v6  ;;  %352 = vmatprep.mubr.bf16.mxu0 %v3989_v28  ;;  %v3449_v32 = vld [vmem:[#allocation6 + $0xa4] ss:$8 sps:$4 sm:$0xff]   ;;  %v3452_v33 = vld [vmem:[#allocation6 + $0xa0] ss:$8 sps:$4 sm:$0xff]   ;;  %v3453_v34 = vld [vmem:[#allocation6 + $0xb4] ss:$8 sps:$4 sm:$0xff]   ;;  %v114_v35 = vpack.c.bf16 %v112_v31, %v112_v31 }
  0x65   :  { %326 = vmatprep.subr.bf16.mxu0 %v3424_v7  ;;  %3048 = vmatpush3.bf16.msra.mxu1 %v3443_v13  ;;  %v3467_v36 = vld [vmem:[#allocation7] sm:$0xff]   ;;  %v3456_v37 = vld [vmem:[#allocation6 + $0xb0] ss:$8 sps:$4 sm:$0xff]   ;;  %v3461_v42 = vld [vmem:[#allocation6 + $0xd4] ss:$8 sps:$4 sm:$0xff]  }
  0x66   :  { %3049 = vmatprep.subr.bf16.mxu1 %v3793_v0  ;;  %v3457_v39 = vld [vmem:[#allocation6 + $0xc4] ss:$8 sps:$4 sm:$0xff]   ;;  %v3460_v40 = vld [vmem:[#allocation6 + $0xc0] ss:$8 sps:$4 sm:$0xff]   ;;  %v3473_v41 = vld [vmem:[#allocation7 + $0x10] sm:$0xff]  }
  0x67   :  { %v3464_v43 = vld [vmem:[#allocation6 + $0xd0] ss:$8 sps:$4 sm:$0xff]   ;;  %v3465_v45 = vld [vmem:[#allocation6 + $0xe4] ss:$8 sps:$4 sm:$0xff]   ;;  %v3468_v46 = vld [vmem:[#allocation6 + $0xe0] ss:$8 sps:$4 sm:$0xff]  }
  0x68   :  { %327 = vmatpush1.bf16.msra.mxu0 %v3426_v9  ;;  %v3474_v44 = vld [vmem:[#allocation7 + $0x18] sm:$0xff]   ;;  %v3475_v47 = vld [vmem:[#allocation7 + $0x20] sm:$0xff]   ;;  %v3476_v50 = vld [vmem:[#allocation7 + $0x28] sm:$0xff]  }
  0x69   :  { %328 = vmatprep.subr.bf16.mxu0 %v3427_v10  ;;  %3050 = vmatpush3.bf16.msra.mxu1 %v3447_v16  ;;  %v3469_v48 = vld [vmem:[#allocation6 + $0xf4] ss:$8 sps:$4 sm:$0xff]   ;;  %v3472_v49 = vld [vmem:[#allocation6 + $0xf0] ss:$8 sps:$4 sm:$0xff]   ;;  %v3479_v53 = vld [vmem:[#allocation4] sm:$0xff]   ;;  %v150_v10 = vlaneseq }
  0x6a   :  { %3051 = vmatprep.subr.bf16.mxu1 %v3793_v0  ;;  %v3477_v51 = vld [vmem:[#allocation7 + $0x30] sm:$0xff]   ;;  %v3478_v52 = vld [vmem:[#allocation7 + $0x38] sm:$0xff]   ;;  %v3480_v54 = vld [vmem:[#allocation4 + $0x40] sm:$0xff]  }
  0x6b   :  { %v3481_v55 = vld [vmem:[#allocation4 + $0x8] sm:$0xff]   ;;  %v3483_v57 = vld [vmem:[#allocation4 + $0x10] sm:$0xff]   ;;  %v3485_v59 = vld [vmem:[#allocation4 + $0x18] sm:$0xff]   ;;  %v151_v11 = vshrl.u32 %v150_v10, 7 }
  0x6c   :  { %329 = vmatpush1.bf16.msra.mxu0 %v3429_v12  ;;  %v3482_v56 = vld [vmem:[#allocation4 + $0x48] sm:$0xff]   ;;  %v3484_v58 = vld [vmem:[#allocation4 + $0x50] sm:$0xff]   ;;  %v3486_v60 = vld [vmem:[#allocation4 + $0x58] sm:$0xff]  }
  0x6d   :  { %330 = vmatprep.subr.bf16.mxu0 %v3430_v14  ;;  %3052 = vmatpush3.bf16.msra.mxu1 %v3451_v19  ;;  %v3487_v61 = vld [vmem:[#allocation4 + $0x20] sm:$0xff]   ;;  %v3489_v63 = vld [vmem:[#allocation4 + $0x28] sm:$0xff]   ;;  %v3491_v2 = vld [vmem:[#allocation4 + $0x30] sm:$0xff]   ;;  %v152_v12 = vsub.s32 0, %v151_v11  ;;  %v156_v14 = vsub.s32 1, %v151_v11 }
  0x6e   :  { %3053 = vmatprep.subr.bf16.mxu1 %v3793_v0  ;;  %v3488_v62 = vld [vmem:[#allocation4 + $0x60] sm:$0xff]   ;;  %v3490_v1 = vld [vmem:[#allocation4 + $0x68] sm:$0xff]   ;;  %v3492_v3 = vld [vmem:[#allocation4 + $0x70] sm:$0xff]  }
  0x6f   :  { %v3493_v4 = vld [vmem:[#allocation4 + $0x38] sm:$0xff]   ;;  %v148_v13 = vld [vmem:[%s4312_s7] sm:$0x3] }
  0x70   :  { %331 = vmatpush1.bf16.msra.mxu0 %v3432_v15  ;;  %v3494_v5 = vld [vmem:[#allocation4 + $0x78] sm:$0xff]   ;;  %v153_v15 = vrot.slane %v148_v13, %v152_v12  ;;  %v3508_v12 = vld [vmem:[#allocation4 + $0xf0] sm:$0xff]  }
  0x71   :  { %332 = vmatprep.subr.bf16.mxu0 %v3433_v17  ;;  %3054 = vmatpush3.bf16.msra.mxu1 %v3455_v22  ;;  %v157_v17 = vrot.slane %v148_v13, %v156_v14  ;;  %v3509_v13 = vld [vmem:[#allocation4 + $0xb8] sm:$0xff]  }
  0x72   :  { %3055 = vmatprep.subr.bf16.mxu1 %v3793_v0 }
  0x74   :  { %333 = vmatpush1.bf16.msra.mxu0 %v3436_v18 }
  0x75   :  { %334 = vmatprep.subr.bf16.mxu0 %v3437_v20  ;;  %3056 = vmatpush3.bf16.msra.mxu1 %v3459_v25 }
  0x76   :  { %3057 = vmatprep.subr.bf16.mxu1 %v3793_v0 }
  0x78   :  { %335 = vmatpush1.bf16.msra.mxu0 %v3440_v21 }
  0x79   :  { %336 = vmatprep.subr.bf16.mxu0 %v3441_v23  ;;  %3058 = vmatpush3.bf16.msra.mxu1 %v3463_v30 }
  0x7a   :  { %3063 = vmatprep.subr.bf16.mxu1 %v3793_v0 }
  0x7c   :  { %337 = vmatpush1.bf16.msra.mxu0 %v3444_v24  ;;  %3060 = vmatmul.mubr.bf16.vlgmr.msra.gmra.mrb[0].mxu1 %v114_v35 }
  0x7d   :  { %338 = vmatprep.subr.bf16.mxu0 %v3445_v27  ;;  %3064 = vmatpush3.bf16.msra.mxu1 %v3467_v36  ;;  %v2696_v36 = vld [vmem:[%s4313_s8] ss:$0 sm:$0xff] }
  0x7e   :  { %3065 = vmatprep.subr.bf16.mxu1 %v3793_v0  ;;  %3079 = vmatprep.mubr.msk.bf16.mxu1 %vm3794_vm0, %v3793_v0 }
  0x80   :  { %339 = vmatpush1.bf16.msra.mxu0 %v3448_v29 }
  0x81   :  { %340 = vmatprep.subr.bf16.mxu0 %v3449_v32  ;;  %3066 = vmatpush3.bf16.msra.mxu1 %v3471_v38 }
  0x82   :  { %3067 = vmatprep.subr.bf16.mxu1 %v3793_v0 }
  0x84   :  { %341 = vmatpush1.bf16.msra.mxu0 %v3452_v33  ;;  %v2705_v33 = vld [vmem:[%s4314_s9] ss:$0 sm:$0xff] }
  0x85   :  { %342 = vmatprep.subr.bf16.mxu0 %v3453_v34  ;;  %3068 = vmatpush3.bf16.msra.mxu1 %v3473_v41  ;;  %v3795_v41 = vmov 1966171168  }
  0x86   :  { %3069 = vmatprep.subr.bf16.mxu1 %v3793_v0 }
  0x88   :  { %343 = vmatpush1.bf16.msra.mxu0 %v3456_v37 }
  0x89   :  { %344 = vmatprep.subr.bf16.mxu0 %v3457_v39  ;;  %3070 = vmatpush3.bf16.msra.mxu1 %v3474_v44 }
  0x8a   :  { %3071 = vmatprep.subr.bf16.mxu1 %v3793_v0 }
  0x8c   :  { %345 = vmatpush1.bf16.msra.mxu0 %v3460_v40 }
  0x8d   :  { %346 = vmatprep.subr.bf16.mxu0 %v3461_v42  ;;  %3072 = vmatpush3.bf16.msra.mxu1 %v3475_v47  ;;  %v606_v42 = vunpack.c.l.s4 %v3795_v41  ;;  %v3530_v41 = vld [vmem:[#allocation4 + $0x1c8] sm:$0xff]  }
  0x8e   :  { %3073 = vmatprep.subr.bf16.mxu1 %v3793_v0 }
  0x8f   :  { %v607_v44 = vunpack.c.0.s8 %v606_v42  ;;  %v3531_v42 = vld [vmem:[#allocation4 + $0x190] sm:$0xff]  }
  0x90   :  { %347 = vmatpush1.bf16.msra.mxu0 %v3464_v43 }
  0x91   :  { %348 = vmatprep.subr.bf16.mxu0 %v3465_v45  ;;  %3074 = vmatpush3.bf16.msra.mxu1 %v3476_v50  ;;  %v610_v47 = vsub.s32 %v607_v44, %v151_v11  ;;  %v3507_v11 = vld [vmem:[#allocation4 + $0xb0] sm:$0xff]   ;;  %v3533_v44 = vld [vmem:[#allocation4 + $0x198] sm:$0xff]  }
  0x92   :  { %3075 = vmatprep.subr.bf16.mxu1 %v3793_v0 }
  0x94   :  { %349 = vmatpush1.bf16.msra.mxu0 %v3468_v46 }
  0x95   :  { %350 = vmatprep.subr.bf16.mxu0 %v3469_v48  ;;  %3076 = vmatpush3.bf16.msra.mxu1 %v3477_v51 }
  0x96   :  { %3077 = vmatprep.subr.bf16.mxu1 %v3793_v0 }
  0x98   :  { %351 = vmatpush1.bf16.msra.mxu0 %v3472_v49 }
  0x99   :  { %3083 = vmatprep.subr.bf16.mxu0 %v3793_v0  ;;  %3078 = vmatpush3.bf16.msra.mxu1 %v3478_v52 }
  0x9a   :  { %3103 = vmatprep.subr.bf16.mxu1 %v3793_v0 }
  0x9b   :  { %353 = vmatmul.mubr.bf16.vlgmr.msra.gmra.mrb[0].mxu0 %v114_v35 }
  0x9c   :  { %3099 = vmatprep.mubr.msk.bf16.mxu0 %vm3794_vm0, %v3793_v0  ;;  %3080 = vmatmul.mubr.bf16.vlgmr.msra.gmra.mrb[4].mxu1 %v3989_v28 }
  0x9d   :  { %3119 = vmatprep.mubr.msk.bf16.mxu1 %vm3794_vm0, %v3793_v0  ;;  %3084 = vmatpush3.bf16.msra.mxu0 %v3479_v53 }
  0x9e   :  { %3085 = vmatprep.subr.bf16.mxu0 %v3793_v0  ;;  %3104 = vmatpush3.bf16.msra.mxu1 %v3480_v54 }
  0x9f   :  { %3105 = vmatprep.subr.bf16.mxu1 %v3793_v0 }
  0xa1   :  { %3086 = vmatpush3.bf16.msra.mxu0 %v3481_v55 }
  0xa2   :  { %3087 = vmatprep.subr.bf16.mxu0 %v3793_v0  ;;  %3106 = vmatpush3.bf16.msra.mxu1 %v3482_v56  ;;  %v3495_v56 = vld [vmem:[#allocation4 + $0x80] sm:$0xff]  }
  0xa3   :  { %3107 = vmatprep.subr.bf16.mxu1 %v3793_v0 }
  0xa5   :  { %3088 = vmatpush3.bf16.msra.mxu0 %v3483_v57 }
  0xa6   :  { %3089 = vmatprep.subr.bf16.mxu0 %v3793_v0  ;;  %3108 = vmatpush3.bf16.msra.mxu1 %v3484_v58 }
  0xa7   :  { %3109 = vmatprep.subr.bf16.mxu1 %v3793_v0 }
  0xa9   :  { %3090 = vmatpush3.bf16.msra.mxu0 %v3485_v59 }
  0xaa   :  { %3091 = vmatprep.subr.bf16.mxu0 %v3793_v0  ;;  %3110 = vmatpush3.bf16.msra.mxu1 %v3486_v60  ;;  %v3496_v60 = vld [vmem:[#allocation4 + $0xc0] sm:$0xff]  }
  0xab   :  { %3111 = vmatprep.subr.bf16.mxu1 %v3793_v0 }
  0xad   :  { %3092 = vmatpush3.bf16.msra.mxu0 %v3487_v61 }
  0xae   :  { %3093 = vmatprep.subr.bf16.mxu0 %v3793_v0  ;;  %3112 = vmatpush3.bf16.msra.mxu1 %v3488_v62  ;;  %v3497_v62 = vld [vmem:[#allocation4 + $0x88] sm:$0xff]  }
  0xaf   :  { %3113 = vmatprep.subr.bf16.mxu1 %v3793_v0 }
  0xb1   :  { %3094 = vmatpush3.bf16.msra.mxu0 %v3489_v63 }
  0xb2   :  { %3095 = vmatprep.subr.bf16.mxu0 %v3793_v0  ;;  %3114 = vmatpush3.bf16.msra.mxu1 %v3490_v1  ;;  %v3498_v1 = vld [vmem:[#allocation4 + $0xc8] sm:$0xff]  }
  0xb3   :  { %3115 = vmatprep.subr.bf16.mxu1 %v3793_v0 }
  0xb5   :  { %3096 = vmatpush3.bf16.msra.mxu0 %v3491_v2  ;;  %v3499_v2 = vld [vmem:[#allocation4 + $0x90] sm:$0xff]  }
  0xb6   :  { %3097 = vmatprep.subr.bf16.mxu0 %v3793_v0  ;;  %3116 = vmatpush3.bf16.msra.mxu1 %v3492_v3  ;;  %v3500_v3 = vld [vmem:[#allocation4 + $0xd0] sm:$0xff]  }
  0xb7   :  { %3117 = vmatprep.subr.bf16.mxu1 %v3793_v0 }
  0xb9   :  { %3098 = vmatpush3.bf16.msra.mxu0 %v3493_v4  ;;  %v3501_v4 = vld [vmem:[#allocation4 + $0x98] sm:$0xff]  }
  0xba   :  { %3123 = vmatprep.subr.bf16.mxu0 %v3793_v0  ;;  %3118 = vmatpush3.bf16.msra.mxu1 %v3494_v5  ;;  %v3502_v5 = vld [vmem:[#allocation4 + $0xd8] sm:$0xff]  }
  0xbb   :  { %3143 = vmatprep.subr.bf16.mxu1 %v3793_v0 }
 0x14f   :  { %v478_v6 = vpop.f32.mrb[0].mxu1 }
 0x150   :  { %v3061_v7 = vpop.f32.mrb[1].mxu1  ;;  %v479_v38 = vadd.f32 %v2696_v36, %v478_v6  ;;  %v3503_v6 = vld [vmem:[#allocation4 + $0xa0] sm:$0xff]  }
 0x151   :  { %v481_v8 = vpop.f32.mrb[2].mxu1  ;;  %v3504_v7 = vld [vmem:[#allocation4 + $0xe0] sm:$0xff]  }
 0x152   :  { %v3062_v9 = vpop.f32.mrb[3].mxu1  ;;  %v3505_v8 = vld [vmem:[#allocation4 + $0xa8] sm:$0xff]   ;;  %v3527_v36 = vld [vmem:[#allocation4 + $0x180] sm:$0xff]  }
 0x153   :  { %v3506_v9 = vld [vmem:[#allocation4 + $0xe8] sm:$0xff]  }
 0x16e   :  { %v354_v16 = vpop.f32.mrb[0].mxu0 }
 0x16f   :  { %v355_v18 = vadd.f32 %v354_v16, %v153_v15  ;;  %v356_v19 = vpop.f32.mrb[1].mxu0  ;;  %v589_v25 = vpop.f32.mrb[4].mxu1  ;;  %v3510_v15 = vld [vmem:[#allocation4 + $0xf8] sm:$0xff]  }
 0x170   :  { %v358_v20 = vpop.f32.mrb[2].mxu0  ;;  %v357_v23 = vadd.f32 %v356_v19, %v157_v17  ;;  %v3081_v27 = vpop.f32.mrb[5].mxu1  ;;  %v590_v35 = vadd.f32 %v2705_v33, %v589_v25  ;;  %v3511_v17 = vld [vmem:[#allocation4 + $0x100] sm:$0xff]   ;;  %v3517_v25 = vld [vmem:[#allocation4 + $0x118] sm:$0xff]   ;;  %v3524_v33 = vld [vmem:[#allocation4 + $0x170] sm:$0xff]  }
 0x171   :  { %v2694_v21 = vmul.f32 -1.442695, %v355_v18  ;;  %v359_v22 = vpop.f32.mrb[3].mxu0  ;;  %v592_v28 = vpop.f32.mrb[6].mxu1  ;;  %v3512_v19 = vld [vmem:[#allocation4 + $0x140] sm:$0xff]   ;;  %v3518_v27 = vld [vmem:[#allocation4 + $0x158] sm:$0xff]  }
 0x172   :  { %v2695_v24 = vmul.f32 -1.442695, %v357_v23  ;;  %v3082_v29 = vpop.f32.mrb[7].mxu1  ;;  %v3514_v22 = vld [vmem:[#allocation4 + $0x148] sm:$0xff]   ;;  %v3515_v23 = vld [vmem:[#allocation4 + $0x110] sm:$0xff]   ;;  %v3519_v28 = vld [vmem:[#allocation4 + $0x120] sm:$0xff]  }
 0x173   :  { %3623 = vpow2.f32 %v2694_v21  ;;  %v3513_v21 = vld [vmem:[#allocation4 + $0x108] sm:$0xff]   ;;  %v3520_v29 = vld [vmem:[#allocation4 + $0x160] sm:$0xff]  }
 0x174   :  { %3625 = vpow2.f32 %v2695_v24  ;;  %v3516_v24 = vld [vmem:[#allocation4 + $0x150] sm:$0xff]  }
 0x17d   :  { %v3624_v30 = vpop.eup %3623 }
 0x17e   :  { %v364_v31 = vadd.f32 1.0, %v3624_v30  ;;  %v3626_v32 = vpop.eup %3625  ;;  %v3521_v30 = vld [vmem:[#allocation4 + $0x128] sm:$0xff]  }
 0x17f   :  { %v370_v34 = vadd.f32 1.0, %v3626_v32  ;;  %v3523_v32 = vld [vmem:[#allocation4 + $0x130] sm:$0xff]  }
 0x180   :  { %3627 = vrcp.f32 %v364_v31  ;;  %v3522_v31 = vld [vmem:[#allocation4 + $0x168] sm:$0xff]  }
 0x181   :  { %3629 = vrcp.f32 %v370_v34  ;;  %v3525_v34 = vld [vmem:[#allocation4 + $0x138] sm:$0xff]  }
 0x18a   :  { %v3628_v37 = vpop.eup %3627 }
 0x18b   :  { %v595_v39 = vmul.f32 %v3628_v37, %v590_v35  ;;  %v3630_v43 = vpop.eup %3629  ;;  %v3526_v35 = vld [vmem:[#allocation4 + $0x178] sm:$0xff]  }
 0x18c   :  { %v598_v45 = vsub.f32 1.0, %v3630_v43  ;;  %v600_v48 = vmul.f32 %v3630_v43, %v3984_v26  ;;  %v3532_v43 = vld [vmem:[#allocation4 + $0x1d0] sm:$0xff]  }
 0x18d   :  { %v596_v40 = vadd.f32 %v595_v39, %v479_v38  ;;  %v3528_v38 = vld [vmem:[#allocation4 + $0x1c0] sm:$0xff]  }
 0x18f   :  { %3631 = vtanh.f32 %v596_v40  ;;  %v3529_v40 = vld [vmem:[#allocation4 + $0x188] sm:$0xff]  }
 0x199   :  { %v3632_v46 = vpop.eup %3631 }
 0x19a   :  { %v599_v49 = vmul.f32 %v3632_v46, %v598_v45  ;;  %v3534_v45 = vld [vmem:[#allocation4 + $0x1d8] sm:$0xff]   ;;  %v3535_v46 = vld [vmem:[#allocation4 + $0x1a0] sm:$0xff]  }
 0x19c   :  { %v601_v50 = vadd.f32 %v600_v48, %v599_v49  ;;  %v3537_v48 = vld [vmem:[#allocation4 + $0x1a8] sm:$0xff]  }
 0x19d   :  { %v3538_v49 = vld [vmem:[#allocation4 + $0x1e8] sm:$0xff]  }
 0x19e   :  { %602 = vst [vmem:[%s4317_s12] sm:$0xff] %v601_v50  ;;  %v611_v51 = vrot.slane %v601_v50, %v610_v47  ;;  %v604_v52 = vcombine.high %v601_v50, %v601_v50  ;;  %v3539_v50 = vld [vmem:[#allocation4 + $0x1b0] sm:$0xff]  }
 0x1a0   :  { %v627_v53 = vrot.slane %v611_v51, %v610_v47  ;;  %v619_v54 = vcombine.high %v611_v51, %v611_v51  ;;  %v618_v55 = vrot.slane %v604_v52, %v610_v47  ;;  %v3540_v51 = vld [vmem:[#allocation4 + $0x1f0] sm:$0xff]   ;;  %v3541_v52 = vld [vmem:[#allocation4 + $0x1b8] sm:$0xff]  }
 0x1a2   :  { %v661_v57 = vpack.c.bf16 %v627_v53, %v627_v53  ;;  %v641_v58 = vrot.slane %v619_v54, %v610_v47  ;;  %v4046_v59 = vrot.slane %v618_v55, %v610_v47  ;;  %v620_v61 = vcombine.high %v618_v55, %v618_v55  ;;  %v3542_v54 = vld [vmem:[#allocation4 + $0x1f8] sm:$0xff]  }
 0x1a3   :  { %v649_v14 = vcombine.high %v627_v53, %v627_v53 }
 0x1a4   :  { %3100 = vmatmul.mubr.bf16.vlgmr.msra.gmra.mrb[4].mxu0 %v661_v57  ;;  %v662_v26 = vpack.c.bf16 %v641_v58, %v641_v58  ;;  %v4050_v63 = vrot.slane %v620_v61, %v610_v47  ;;  %v651_v16 = vcombine.high %v641_v58, %v641_v58  ;;  %v665_v37 = vpack.c.bf16 %v4046_v59, %v4046_v59  ;;  %v3536_v47 = vld [vmem:[#allocation4 + $0x1e0] sm:$0xff]  }
 0x1a5   :  { %3124 = vmatpush3.bf16.msra.mxu0 %v3495_v56  ;;  %3139 = vmatprep.mubr.msk.bf16.mxu0 %vm3794_vm0, %v3793_v0  ;;  %v663_v18 = vpack.c.bf16 %v649_v14, %v649_v14  ;;  %v650_v53 = vcombine.high %v4046_v59, %v4046_v59  ;;  %v4123_v58 = vand.u32 127, %v150_v10 }
 0x1a6   :  { %3120 = vmatmul.mubr.bf16.vlgmr.msra.gmra.mrb[8].mxu1 %v662_v26  ;;  %3125 = vmatprep.subr.bf16.mxu0 %v3793_v0  ;;  %v664_v20 = vpack.c.bf16 %v651_v16, %v651_v16  ;;  %v666_v39 = vpack.c.bf16 %v4050_v63, %v4050_v63  ;;  %v652_v55 = vcombine.high %v4050_v63, %v4050_v63 }
 0x1a7   :  { %3144 = vmatpush3.bf16.msra.mxu1 %v3496_v60  ;;  %3159 = vmatprep.mubr.msk.bf16.mxu1 %vm3794_vm0, %v3793_v0  ;;  %v667_v56 = vpack.c.bf16 %v650_v53, %v650_v53  ;;  %vm1503_vm1 = vcmp.lt.s32.totalorder %v4123_v58, 8 }
 0x1a8   :  { %3145 = vmatprep.subr.bf16.mxu1 %v3793_v0  ;;  %v668_v57 = vpack.c.bf16 %v652_v55, %v652_v55 }
 0x1a9   :  { %3126 = vmatpush3.bf16.msra.mxu0 %v3497_v62 }
 0x1aa   :  { %3127 = vmatprep.subr.bf16.mxu0 %v3793_v0 }
 0x1ab   :  { %3146 = vmatpush3.bf16.msra.mxu1 %v3498_v1 }
 0x1ac   :  { %3147 = vmatprep.subr.bf16.mxu1 %v3793_v0 }
 0x1ad   :  { %3128 = vmatpush3.bf16.msra.mxu0 %v3499_v2 }
 0x1ae   :  { %3129 = vmatprep.subr.bf16.mxu0 %v3793_v0 }
 0x1af   :  { %3148 = vmatpush3.bf16.msra.mxu1 %v3500_v3 }
 0x1b0   :  { %3149 = vmatprep.subr.bf16.mxu1 %v3793_v0 }
 0x1b1   :  { %3130 = vmatpush3.bf16.msra.mxu0 %v3501_v4 }
 0x1b2   :  { %3131 = vmatprep.subr.bf16.mxu0 %v3793_v0 }
 0x1b3   :  { %3150 = vmatpush3.bf16.msra.mxu1 %v3502_v5 }
 0x1b4   :  { %3151 = vmatprep.subr.bf16.mxu1 %v3793_v0 }
 0x1b5   :  { %3132 = vmatpush3.bf16.msra.mxu0 %v3503_v6 }
 0x1b6   :  { %3133 = vmatprep.subr.bf16.mxu0 %v3793_v0 }
 0x1b7   :  { %3152 = vmatpush3.bf16.msra.mxu1 %v3504_v7 }
 0x1b8   :  { %3153 = vmatprep.subr.bf16.mxu1 %v3793_v0 }
 0x1b9   :  { %3134 = vmatpush3.bf16.msra.mxu0 %v3505_v8 }
 0x1ba   :  { %3135 = vmatprep.subr.bf16.mxu0 %v3793_v0 }
 0x1bb   :  { %3154 = vmatpush3.bf16.msra.mxu1 %v3506_v9 }
 0x1bc   :  { %3155 = vmatprep.subr.bf16.mxu1 %v3793_v0 }
 0x1bd   :  { %3136 = vmatpush3.bf16.msra.mxu0 %v3507_v11 }
 0x1be   :  { %3137 = vmatprep.subr.bf16.mxu0 %v3793_v0 }
 0x1bf   :  { %3156 = vmatpush3.bf16.msra.mxu1 %v3508_v12 }
 0x1c0   :  { %3157 = vmatprep.subr.bf16.mxu1 %v3793_v0 }
 0x1c1   :  { %3138 = vmatpush3.bf16.msra.mxu0 %v3509_v13 }
 0x1c2   :  { %3163 = vmatprep.subr.bf16.mxu0 %v3793_v0 }
 0x1c3   :  { %3158 = vmatpush3.bf16.msra.mxu1 %v3510_v15 }
 0x1c4   :  { %3140 = vmatmul.mubr.bf16.vlgmr.msra.gmra.mrb[8].mxu0 %v663_v18  ;;  %3183 = vmatprep.subr.bf16.mxu1 %v3793_v0 }
 0x1c5   :  { %3164 = vmatpush3.bf16.msra.mxu0 %v3511_v17  ;;  %3179 = vmatprep.mubr.msk.bf16.mxu0 %vm3794_vm0, %v3793_v0 }
 0x1c6   :  { %3160 = vmatmul.mubr.bf16.vlgmr.msra.gmra.mrb[12].mxu1 %v664_v20  ;;  %3165 = vmatprep.subr.bf16.mxu0 %v3793_v0 }
 0x1c7   :  { %3184 = vmatpush3.bf16.msra.mxu1 %v3512_v19  ;;  %3199 = vmatprep.mubr.msk.bf16.mxu1 %vm3794_vm0, %v3793_v0 }
 0x1c8   :  { %3185 = vmatprep.subr.bf16.mxu1 %v3793_v0 }
 0x1c9   :  { %3166 = vmatpush3.bf16.msra.mxu0 %v3513_v21 }
 0x1ca   :  { %3167 = vmatprep.subr.bf16.mxu0 %v3793_v0 }
 0x1cb   :  { %3186 = vmatpush3.bf16.msra.mxu1 %v3514_v22 }
 0x1cc   :  { %3187 = vmatprep.subr.bf16.mxu1 %v3793_v0 }
 0x1cd   :  { %3168 = vmatpush3.bf16.msra.mxu0 %v3515_v23 }
 0x1ce   :  { %3169 = vmatprep.subr.bf16.mxu0 %v3793_v0 }
 0x1cf   :  { %3188 = vmatpush3.bf16.msra.mxu1 %v3516_v24 }
 0x1d0   :  { %3189 = vmatprep.subr.bf16.mxu1 %v3793_v0 }
 0x1d1   :  { %3170 = vmatpush3.bf16.msra.mxu0 %v3517_v25 }
 0x1d2   :  { %3171 = vmatprep.subr.bf16.mxu0 %v3793_v0 }
 0x1d3   :  { %3190 = vmatpush3.bf16.msra.mxu1 %v3518_v27 }
 0x1d4   :  { %3191 = vmatprep.subr.bf16.mxu1 %v3793_v0 }
 0x1d5   :  { %3172 = vmatpush3.bf16.msra.mxu0 %v3519_v28 }
 0x1d6   :  { %3173 = vmatprep.subr.bf16.mxu0 %v3793_v0 }
 0x1d7   :  { %3192 = vmatpush3.bf16.msra.mxu1 %v3520_v29 }
 0x1d8   :  { %3193 = vmatprep.subr.bf16.mxu1 %v3793_v0 }
 0x1d9   :  { %3174 = vmatpush3.bf16.msra.mxu0 %v3521_v30 }
 0x1da   :  { %3175 = vmatprep.subr.bf16.mxu0 %v3793_v0 }
 0x1db   :  { %3194 = vmatpush3.bf16.msra.mxu1 %v3522_v31 }
 0x1dc   :  { %3195 = vmatprep.subr.bf16.mxu1 %v3793_v0 }
 0x1dd   :  { %3176 = vmatpush3.bf16.msra.mxu0 %v3523_v32 }
 0x1de   :  { %3177 = vmatprep.subr.bf16.mxu0 %v3793_v0 }
 0x1df   :  { %3196 = vmatpush3.bf16.msra.mxu1 %v3524_v33 }
 0x1e0   :  { %3197 = vmatprep.subr.bf16.mxu1 %v3793_v0 }
 0x1e1   :  { %3178 = vmatpush3.bf16.msra.mxu0 %v3525_v34 }
 0x1e2   :  { %3203 = vmatprep.subr.bf16.mxu0 %v3793_v0 }
 0x1e3   :  { %3198 = vmatpush3.bf16.msra.mxu1 %v3526_v35 }
 0x1e4   :  { %3180 = vmatmul.mubr.bf16.vlgmr.msra.gmra.mrb[12].mxu0 %v665_v37  ;;  %3223 = vmatprep.subr.bf16.mxu1 %v3793_v0 }
 0x1e5   :  { %3204 = vmatpush3.bf16.msra.mxu0 %v3527_v36  ;;  %3219 = vmatprep.mubr.msk.bf16.mxu0 %vm3794_vm0, %v3793_v0 }
 0x1e6   :  { %3200 = vmatmul.mubr.bf16.vlgmr.msra.gmra.mrb[16].mxu1 %v666_v39  ;;  %3205 = vmatprep.subr.bf16.mxu0 %v3793_v0 }
 0x1e7   :  { %3224 = vmatpush3.bf16.msra.mxu1 %v3528_v38  ;;  %3239 = vmatprep.mubr.msk.bf16.mxu1 %vm3794_vm0, %v3793_v0  ;;  %v3543_v38 = vld [vmem:[#allocation2] sm:$0xff]  }
 0x1e8   :  { %3225 = vmatprep.subr.bf16.mxu1 %v3793_v0 }
 0x1e9   :  { %3206 = vmatpush3.bf16.msra.mxu0 %v3529_v40  ;;  %v3545_v40 = vld [vmem:[#allocation2 + $0x40] sm:$0xff]  }
 0x1ea   :  { %3207 = vmatprep.subr.bf16.mxu0 %v3793_v0 }
 0x1eb   :  { %3226 = vmatpush3.bf16.msra.mxu1 %v3530_v41 }
 0x1ec   :  { %3227 = vmatprep.subr.bf16.mxu1 %v3793_v0 }
 0x1ed   :  { %3208 = vmatpush3.bf16.msra.mxu0 %v3531_v42  ;;  %v3544_v42 = vld [vmem:[#allocation2 + $0x8] sm:$0xff]  }
 0x1ee   :  { %3209 = vmatprep.subr.bf16.mxu0 %v3793_v0 }
 0x1ef   :  { %3228 = vmatpush3.bf16.msra.mxu1 %v3532_v43  ;;  %v3547_v43 = vld [vmem:[#allocation2 + $0x48] sm:$0xff]  }
 0x1f0   :  { %3229 = vmatprep.subr.bf16.mxu1 %v3793_v0 }
 0x1f1   :  { %3210 = vmatpush3.bf16.msra.mxu0 %v3533_v44  ;;  %v3546_v44 = vld [vmem:[#allocation2 + $0x10] sm:$0xff]  }
 0x1f2   :  { %3211 = vmatprep.subr.bf16.mxu0 %v3793_v0 }
 0x1f3   :  { %3230 = vmatpush3.bf16.msra.mxu1 %v3534_v45  ;;  %v3549_v45 = vld [vmem:[#allocation2 + $0x50] sm:$0xff]  }
 0x1f4   :  { %3231 = vmatprep.subr.bf16.mxu1 %v3793_v0 }
 0x1f5   :  { %3212 = vmatpush3.bf16.msra.mxu0 %v3535_v46  ;;  %v3548_v46 = vld [vmem:[#allocation2 + $0x18] sm:$0xff]  }
 0x1f6   :  { %3213 = vmatprep.subr.bf16.mxu0 %v3793_v0 }
 0x1f7   :  { %3232 = vmatpush3.bf16.msra.mxu1 %v3536_v47 }
 0x1f8   :  { %3233 = vmatprep.subr.bf16.mxu1 %v3793_v0 }
 0x1f9   :  { %3214 = vmatpush3.bf16.msra.mxu0 %v3537_v48 }
 0x1fa   :  { %3215 = vmatprep.subr.bf16.mxu0 %v3793_v0 }
 0x1fb   :  { %3234 = vmatpush3.bf16.msra.mxu1 %v3538_v49 }
 0x1fc   :  { %3235 = vmatprep.subr.bf16.mxu1 %v3793_v0 }
 0x1fd   :  { %3216 = vmatpush3.bf16.msra.mxu0 %v3539_v50 }
 0x1fe   :  { %3217 = vmatprep.subr.bf16.mxu0 %v3793_v0 }
 0x1ff   :  { %3236 = vmatpush3.bf16.msra.mxu1 %v3540_v51 }
 0x200   :  { %3237 = vmatprep.subr.bf16.mxu1 %v3793_v0 }
 0x201   :  { %3218 = vmatpush3.bf16.msra.mxu0 %v3541_v52 }
 0x202   :  { %3243 = vmatprep.subr.bf16.mxu0 %v3793_v0 }
 0x203   :  { %3238 = vmatpush3.bf16.msra.mxu1 %v3542_v54 }
 0x204   :  { %3220 = vmatmul.mubr.bf16.vlgmr.msra.gmra.mrb[16].mxu0 %v667_v56  ;;  %3263 = vmatprep.subr.bf16.mxu1 %v3793_v0 }
 0x205   :  { %3259 = vmatprep.mubr.msk.bf16.mxu0 %vm3794_vm0, %v3793_v0  ;;  %3244 = vmatpush3.bf16.msra.mxu0 %v3543_v38 }
 0x206   :  { %3240 = vmatmul.mubr.bf16.vlgmr.msra.gmra.mrb[20].mxu1 %v668_v57  ;;  %3245 = vmatprep.subr.bf16.mxu0 %v3793_v0 }
 0x207   :  { %3279 = vmatprep.mubr.msk.bf16.mxu1 %vm3794_vm0, %v3793_v0  ;;  %3264 = vmatpush3.bf16.msra.mxu1 %v3545_v40 }
 0x208   :  { %3265 = vmatprep.subr.bf16.mxu1 %v3793_v0 }
 0x209   :  { %3246 = vmatpush3.bf16.msra.mxu0 %v3544_v42  ;;  %v3561_v42 = vld [vmem:[#allocation2 + $0xc0] sm:$0xff]  }
 0x20a   :  { %3247 = vmatprep.subr.bf16.mxu0 %v3793_v0 }
 0x20b   :  { %3266 = vmatpush3.bf16.msra.mxu1 %v3547_v43 }
 0x20c   :  { %3267 = vmatprep.subr.bf16.mxu1 %v3793_v0 }
 0x20d   :  { %3248 = vmatpush3.bf16.msra.mxu0 %v3546_v44 }
 0x20e   :  { %3249 = vmatprep.subr.bf16.mxu0 %v3793_v0 }
 0x20f   :  { %3268 = vmatpush3.bf16.msra.mxu1 %v3549_v45 }
 0x210   :  { %3269 = vmatprep.subr.bf16.mxu1 %v3793_v0 }
 0x211   :  { %3250 = vmatpush3.bf16.msra.mxu0 %v3548_v46  ;;  %v3562_v46 = vld [vmem:[#allocation2 + $0x90] sm:$0xff]  }
 0x212   :  { %3251 = vmatprep.subr.bf16.mxu0 %v3793_v0 }
 0x277   :  { %v879_v59 = vpop.f32.mrb[4].mxu0 }
 0x278   :  { %v4128_v60 = vsel %vm1503_vm1, %v879_v59, -1e+30  ;;  %v3101_v61 = vpop.f32.mrb[5].mxu0 }
 0x279   :  { %v882_v26 = vpop.f32.mrb[6].mxu0  ;;  %v967_v62 = vpop.f32.mrb[8].mxu1  ;;  %v1513_v63 = vsel %vm1512_vm2, %v4128_v60, -inf }
 0x27a   :  { %v4134_v1 = vsel %vm1503_vm1, %v967_v62, -1e+30  ;;  %1514 = vmax.xlane.f32.xlu0 %v1513_v63  ;;  %v3102_v10 = vpop.f32.mrb[7].mxu0  ;;  %v3121_v2 = vpop.f32.mrb[9].mxu1  ;;  %v3550_v26 = vld [vmem:[#allocation2 + $0x20] sm:$0xff]   ;;  %v3551_v62 = vld [vmem:[#allocation2 + $0x58] sm:$0xff]  }
 0x27b   :  { %v970_v3 = vpop.f32.mrb[10].mxu1  ;;  %v1516_v5 = vsel %vm1512_vm2, %v4134_v1, -inf  ;;  %3252 = vmatpush3.bf16.msra.mxu0 %v3550_v26  ;;  %3270 = vmatpush3.bf16.msra.mxu1 %v3551_v62  ;;  %v3552_v63 = vld [vmem:[#allocation2 + $0x28] sm:$0xff]   ;;  %v3553_v10 = vld [vmem:[#allocation2 + $0x60] sm:$0xff]   ;;  %v3573_v26 = vld [vmem:[#allocation2 + $0xf0] sm:$0xff]  }
 0x27c   :  { %v3122_v4 = vpop.f32.mrb[11].mxu1  ;;  %3253 = vmatprep.subr.bf16.mxu0 %v3793_v0  ;;  %3271 = vmatprep.subr.bf16.mxu1 %v3793_v0 }
 0x27e   :  { %1517 = vmax.xlane.f32.xlu0 %v1516_v5  ;;  %v3554_v5 = vld [vmem:[#allocation2 + $0x30] sm:$0xff]  }
 0x27f   :  { %3254 = vmatpush3.bf16.msra.mxu0 %v3552_v63  ;;  %3272 = vmatpush3.bf16.msra.mxu1 %v3553_v10 }
 0x280   :  { %3255 = vmatprep.subr.bf16.mxu0 %v3793_v0  ;;  %3273 = vmatprep.subr.bf16.mxu1 %v3793_v0 }
 0x283   :  { %3256 = vmatpush3.bf16.msra.mxu0 %v3554_v5  ;;  %v3577_v5 = vld [vmem:[#allocation2 + $0x140] sm:$0xff]  }
 0x284   :  { %3257 = vmatprep.subr.bf16.mxu0 %v3793_v0 }
 0x297   :  { %v1055_v6 = vpop.f32.mrb[8].mxu0 }
 0x298   :  { %v4140_v7 = vsel %vm1503_vm1, %v1055_v6, -1e+30  ;;  %v3141_v8 = vpop.f32.mrb[9].mxu0  ;;  %v3555_v6 = vld [vmem:[#allocation2 + $0x68] sm:$0xff]  }
 0x299   :  { %v1058_v9 = vpop.f32.mrb[10].mxu0  ;;  %v1143_v11 = vpop.f32.mrb[12].mxu1  ;;  %v1519_v12 = vsel %vm1512_vm2, %v4140_v7, -inf  ;;  %3274 = vmatpush3.bf16.msra.mxu1 %v3555_v6 }
 0x29a   :  { %v4146_v13 = vsel %vm1503_vm1, %v1143_v11, -1e+30  ;;  %1520 = vmax.xlane.f32.xlu1 %v1519_v12  ;;  %v3142_v14 = vpop.f32.mrb[11].mxu0  ;;  %v3161_v15 = vpop.f32.mrb[13].mxu1  ;;  %3275 = vmatprep.subr.bf16.mxu1 %v3793_v0  ;;  %v3557_v9 = vld [vmem:[#allocation2 + $0x70] sm:$0xff]   ;;  %v3558_v11 = vld [vmem:[#allocation2 + $0x78] sm:$0xff]  }
 0x29b   :  { %v1146_v16 = vpop.f32.mrb[14].mxu1  ;;  %v1522_v18 = vsel %vm1512_vm2, %v4146_v13, -inf }
 0x29c   :  { %v3162_v17 = vpop.f32.mrb[15].mxu1 }
 0x29d   :  { %3276 = vmatpush3.bf16.msra.mxu1 %v3557_v9  ;;  %v3580_v9 = vld [vmem:[#allocation2 + $0x118] sm:$0xff]  }
 0x29e   :  { %1523 = vmax.xlane.f32.xlu1 %v1522_v18  ;;  %3277 = vmatprep.subr.bf16.mxu1 %v3793_v0 }
 0x2a1   :  { %3278 = vmatpush3.bf16.msra.mxu1 %v3558_v11  ;;  %v3581_v11 = vld [vmem:[#allocation2 + $0x150] sm:$0xff]  }
 0x2a2   :  { %3303 = vmatprep.subr.bf16.mxu1 %v3793_v0 }
 0x2b7   :  { %v1231_v19 = vpop.f32.mrb[12].mxu0 }
 0x2b8   :  { %v4152_v20 = vsel %vm1503_vm1, %v1231_v19, -1e+30  ;;  %v3181_v21 = vpop.f32.mrb[13].mxu0 }
 0x2b9   :  { %v1234_v22 = vpop.f32.mrb[14].mxu0  ;;  %v1319_v23 = vpop.f32.mrb[16].mxu1  ;;  %v1525_v24 = vsel %vm1512_vm2, %v4152_v20, -inf }
 0x2ba   :  { %v4158_v25 = vsel %vm1503_vm1, %v1319_v23, -1e+30  ;;  %1526 = vmax.xlane.f32.xlu0 %v1525_v24  ;;  %v3182_v27 = vpop.f32.mrb[15].mxu0  ;;  %v3201_v28 = vpop.f32.mrb[17].mxu1 }
 0x2bb   :  { %v1322_v29 = vpop.f32.mrb[18].mxu1  ;;  %v1528_v30 = vsel %vm1512_vm2, %v4158_v25, -inf }
 0x2bc   :  { %1529 = vmax.xlane.f32.xlu1 %v1528_v30  ;;  %v3202_v31 = vpop.f32.mrb[19].mxu1 }
 0x2d7   :  { %v1407_v32 = vpop.f32.mrb[16].mxu0 }
 0x2d8   :  { %v3221_v33 = vpop.f32.mrb[17].mxu0  ;;  %v4177_v55 = vsel %vm1503_vm1, %v1407_v32, -1e+30 }
 0x2d9   :  { %v1410_v34 = vpop.f32.mrb[18].mxu0  ;;  %v1495_v35 = vpop.f32.mrb[20].mxu1  ;;  %v1531_v57 = vsel %vm1512_vm2, %v4177_v55, -inf }
 0x2da   :  { %v3222_v36 = vpop.f32.mrb[19].mxu0  ;;  %v3241_v37 = vpop.f32.mrb[21].mxu1 }
 0x2db   :  { %v1498_v39 = vpop.f32.mrb[22].mxu1  ;;  %v3559_v37 = vld [vmem:[#allocation2 + $0x80] sm:$0xff]  }
 0x2dc   :  { %v3242_v41 = vpop.f32.mrb[23].mxu1 }
 0x2dd   :  { %v3560_v41 = vld [vmem:[#allocation2 + $0x88] sm:$0xff]  }
 0x307   :  { %v1515_v47 = vpop.xlane.xlu0 %1514 }
 0x308   :  { %v1537_v48 = vsub.f32 %v4128_v60, %v1515_v47  ;;  %v4187_v60 = vsel %vm1503_vm1, %v1495_v35, -1e+30  ;;  %v3563_v47 = vld [vmem:[#allocation2 + $0xc8] sm:$0xff]  }
 0x309   :  { %v1534_v61 = vsel %vm1512_vm2, %v4187_v60, -inf }
 0x30a   :  { %v1545_v49 = vmul.f32 1.442695, %v1537_v48 }
 0x30b   :  { %v1518_v50 = vpop.xlane.xlu0 %1517 }
 0x30c   :  { %3633 = vpow2.f32 %v1545_v49  ;;  %v1538_v51 = vsub.f32 %v4134_v1, %v1518_v50  ;;  %v3564_v50 = vld [vmem:[#allocation2 + $0x98] sm:$0xff]  }
 0x30e   :  { %v1547_v52 = vmul.f32 1.442695, %v1538_v51  ;;  %v3565_v51 = vld [vmem:[#allocation2 + $0xd0] sm:$0xff]  }
 0x310   :  { %3635 = vpow2.f32 %v1547_v52  ;;  %v3566_v52 = vld [vmem:[#allocation2 + $0xa0] sm:$0xff]  }
 0x316   :  { %v4171_v53 = vpop.eup %3633 }
 0x317   :  { %v1561_v54 = vsel %vm1512_vm2, %v4171_v53, 0.0 }
 0x318   :  { %1562 = vadd.xlane.f32.xlu0 %v1561_v54 }
 0x31a   :  { %v4179_v56 = vpop.eup %3635 }
 0x31b   :  { %v1564_v59 = vsel %vm1512_vm2, %v4179_v56, 0.0 }
 0x31c   :  { %1532 = vmax.xlane.f32.xlu0 %v1531_v57  ;;  %1565 = vadd.xlane.f32.xlu1 %v1564_v59  ;;  %v3570_v59 = vld [vmem:[#allocation2 + $0xb0] sm:$0xff]  }
 0x320   :  { %1535 = vmax.xlane.f32.xlu1 %v1534_v61  ;;  %v3572_v61 = vld [vmem:[#allocation2 + $0xb8] sm:$0xff]  }
 0x327   :  { %v1521_v1 = vpop.xlane.xlu1 %1520 }
 0x328   :  { %v1539_v58 = vsub.f32 %v4140_v7, %v1521_v1  ;;  %v3556_v7 = vld [vmem:[#allocation2 + $0x38] sm:$0xff]  }
 0x329   :  { %3258 = vmatpush3.bf16.msra.mxu0 %v3556_v7  ;;  %v3574_v1 = vld [vmem:[#allocation2 + $0xf8] sm:$0xff]   ;;  %v3579_v7 = vld [vmem:[#allocation2 + $0x148] sm:$0xff]  }
 0x32a   :  { %v1549_v2 = vmul.f32 1.442695, %v1539_v58  ;;  %3283 = vmatprep.subr.bf16.mxu0 %v3793_v0  ;;  %v3575_v58 = vld [vmem:[#allocation2 + $0x100] sm:$0xff]  }
 0x32b   :  { %v1524_v3 = vpop.xlane.xlu1 %1523 }
 0x32c   :  { %3637 = vpow2.f32 %v1549_v2  ;;  %v1540_v4 = vsub.f32 %v4146_v13, %v1524_v3 }
 0x32e   :  { %v1551_v8 = vmul.f32 1.442695, %v1540_v4  ;;  %v3576_v4 = vld [vmem:[#allocation2 + $0x108] sm:$0xff]  }
 0x330   :  { %3639 = vpow2.f32 %v1551_v8  ;;  %v3578_v8 = vld [vmem:[#allocation2 + $0x110] sm:$0xff]  }
 0x336   :  { %v4201_v12 = vpop.eup %3637 }
 0x337   :  { %v1567_v13 = vsel %vm1512_vm2, %v4201_v12, 0.0 }
 0x338   :  { %1568 = vadd.xlane.f32.xlu0 %v1567_v13  ;;  %v3583_v13 = vld [vmem:[#allocation2 + $0x158] sm:$0xff]  }
 0x33a   :  { %v4206_v14 = vpop.eup %3639 }
 0x33b   :  { %v1570_v15 = vsel %vm1512_vm2, %v4206_v14, 0.0 }
 0x33c   :  { %1571 = vadd.xlane.f32.xlu1 %v1570_v15  ;;  %v3584_v15 = vld [vmem:[#allocation2 + $0x128] sm:$0xff]  }
 0x347   :  { %v1527_v16 = vpop.xlane.xlu0 %1526 }
 0x348   :  { %v1541_v17 = vsub.f32 %v4152_v20, %v1527_v16  ;;  %v3585_v16 = vld [vmem:[#allocation2 + $0x160] sm:$0xff]  }
 0x349   :  { %v1530_v18 = vpop.xlane.xlu1 %1529 }
 0x34a   :  { %v1553_v19 = vmul.f32 1.442695, %v1541_v17  ;;  %v1542_v21 = vsub.f32 %v4158_v25, %v1530_v18  ;;  %v3586_v18 = vld [vmem:[#allocation2 + $0x130] sm:$0xff]  }
 0x34c   :  { %3641 = vpow2.f32 %v1553_v19  ;;  %v1555_v22 = vmul.f32 1.442695, %v1542_v21  ;;  %v3587_v19 = vld [vmem:[#allocation2 + $0x168] sm:$0xff]   ;;  %v3588_v21 = vld [vmem:[#allocation2 + $0x138] sm:$0xff]  }
 0x34e   :  { %3643 = vpow2.f32 %v1555_v22  ;;  %v3589_v22 = vld [vmem:[#allocation2 + $0x170] sm:$0xff]  }
 0x356   :  { %v4212_v23 = vpop.eup %3641 }
 0x357   :  { %v1573_v24 = vsel %vm1512_vm2, %v4212_v23, 0.0 }
 0x358   :  { %v4216_v27 = vpop.eup %3643  ;;  %1574 = vadd.xlane.f32.xlu0 %v1573_v24 }
 0x359   :  { %v1576_v28 = vsel %vm1512_vm2, %v4216_v27, 0.0 }
 0x35a   :  { %1577 = vadd.xlane.f32.xlu1 %v1576_v28 }
 0x3a5   :  { %v1563_v20 = vpop.xlane.xlu0 %1562 }
 0x3a6   :  { %3645 = vrcp.f32 %v1563_v20 }
 0x3a9   :  { %v1533_v29 = vpop.xlane.xlu0 %1532  ;;  %v1566_v30 = vpop.xlane.xlu1 %1565 }
 0x3aa   :  { %v1543_v25 = vsub.f32 %v4177_v55, %v1533_v29  ;;  %3647 = vrcp.f32 %v1566_v30  ;;  %v3568_v55 = vld [vmem:[#allocation2 + $0xa8] sm:$0xff]   ;;  %v3590_v29 = vld [vmem:[#allocation2 + $0x178] sm:$0xff]   ;;  %v3591_v30 = vld [vmem:[#allocation2 + $0x180] sm:$0xff]  }
 0x3ac   :  { %v1557_v31 = vmul.f32 1.442695, %v1543_v25 }
 0x3ad   :  { %v1536_v32 = vpop.xlane.xlu1 %1535 }
 0x3ae   :  { %3649 = vpow2.f32 %v1557_v31  ;;  %v1544_v33 = vsub.f32 %v4187_v60, %v1536_v32  ;;  %v3571_v60 = vld [vmem:[#allocation2 + $0xe8] sm:$0xff]  }
 0x3af   :  { %v3592_v32 = vld [vmem:[#allocation2 + $0x188] sm:$0xff]  }
 0x3b0   :  { %v3646_v34 = vpop.eup %3645  ;;  %v1559_v35 = vmul.f32 1.442695, %v1544_v33  ;;  %v3593_v33 = vld [vmem:[#allocation2 + $0x1c0] sm:$0xff]  }
 0x3b1   :  { %v1586_v36 = vmul.f32 %v3646_v34, %v4171_v53  ;;  %v3567_v53 = vld [vmem:[#allocation2 + $0xd8] sm:$0xff]  }
 0x3b2   :  { %3651 = vpow2.f32 %v1559_v35  ;;  %v3596_v35 = vld [vmem:[#allocation2 + $0x198] sm:$0xff]  }
 0x3b3   :  { %v1601_v38 = vpack.c.bf16 %v1586_v36, %v1586_v36  ;;  %v3597_v36 = vld [vmem:[#allocation2 + $0x1d0] sm:$0xff]  }
 0x3b4   :  { %v3648_v39 = vpop.eup %3647 }
 0x3b5   :  { %3260 = vmatmul.mubr.bf16.vlgmr.msra.gmra.mrb[20].mxu0 %v1601_v38  ;;  %v1588_v40 = vmul.f32 %v3648_v39, %v4179_v56  ;;  %v3569_v56 = vld [vmem:[#allocation2 + $0xe0] sm:$0xff]   ;;  %v3599_v38 = vld [vmem:[#allocation2 + $0x1d8] sm:$0xff]   ;;  %v3600_v39 = vld [vmem:[#allocation2 + $0x1a8] sm:$0xff]  }
 0x3b6   :  { %3284 = vmatpush3.bf16.msra.mxu0 %v3559_v37  ;;  %3299 = vmatprep.mubr.msk.bf16.mxu0 %vm3794_vm0, %v3793_v0  ;;  %v3598_v37 = vld [vmem:[#allocation2 + $0x1a0] sm:$0xff]  }
 0x3b7   :  { %3285 = vmatprep.subr.bf16.mxu0 %v3793_v0  ;;  %v1602_v43 = vpack.c.bf16 %v1588_v40, %v1588_v40  ;;  %v3601_v40 = vld [vmem:[#allocation2 + $0x1e0] sm:$0xff]  }
 0x3b8   :  { %v4227_v44 = vpop.eup %3649 }
 0x3b9   :  { %3280 = vmatmul.mubr.bf16.vlgmr.msra.gmra.mrb[24].mxu1 %v1602_v43  ;;  %v1579_v45 = vsel %vm1512_vm2, %v4227_v44, 0.0  ;;  %v3604_v43 = vld [vmem:[#allocation2 + $0x1b8] sm:$0xff]  }
 0x3ba   :  { %3286 = vmatpush3.bf16.msra.mxu0 %v3560_v41  ;;  %3304 = vmatpush3.bf16.msra.mxu1 %v3561_v42  ;;  %v3602_v41 = vld [vmem:[#allocation2 + $0x1b0] sm:$0xff]   ;;  %v3603_v42 = vld [vmem:[#allocation2 + $0x1e8] sm:$0xff]  }
 0x3bb   :  { %1580 = vadd.xlane.f32.xlu0 %v1579_v45  ;;  %3287 = vmatprep.subr.bf16.mxu0 %v3793_v0  ;;  %v3605_v45 = vld [vmem:[#allocation2 + $0x1f0] sm:$0xff]  }
 0x3bc   :  { %v4232_v48 = vpop.eup %3651  ;;  %3305 = vmatprep.subr.bf16.mxu1 %v3793_v0  ;;  %3319 = vmatprep.mubr.msk.bf16.mxu1 %vm3794_vm0, %v3793_v0 }
 0x3bd   :  { %v1582_v49 = vsel %vm1512_vm2, %v4232_v48, 0.0 }
 0x3be   :  { %3288 = vmatpush3.bf16.msra.mxu0 %v3562_v46  ;;  %3306 = vmatpush3.bf16.msra.mxu1 %v3563_v47  ;;  %v3606_v46 = vld [vmem:[#allocation2 + $0x1f8] sm:$0xff]  }
 0x3bf   :  { %1583 = vadd.xlane.f32.xlu1 %v1582_v49  ;;  %3289 = vmatprep.subr.bf16.mxu0 %v3793_v0 }
 0x3c0   :  { %3307 = vmatprep.subr.bf16.mxu1 %v3793_v0 }
 0x3c2   :  { %3290 = vmatpush3.bf16.msra.mxu0 %v3564_v50  ;;  %3308 = vmatpush3.bf16.msra.mxu1 %v3565_v51  ;;  %v3607_v50 = vld [vmem:[#allocation9 + $0x40] sm:$0xff]  }
 0x3c3   :  { %3291 = vmatprep.subr.bf16.mxu0 %v3793_v0  ;;  %3309 = vmatprep.subr.bf16.mxu1 %v3793_v0 }
 0x3c5   :  { %v1569_v54 = vpop.xlane.xlu0 %1568 }
 0x3c6   :  { %3653 = vrcp.f32 %v1569_v54  ;;  %3292 = vmatpush3.bf16.msra.mxu0 %v3566_v52  ;;  %3310 = vmatpush3.bf16.msra.mxu1 %v3567_v53  ;;  %v3608_v53 = vld [vmem:[#allocation9] sm:$0xff]  }
 0x3c7   :  { %3293 = vmatprep.subr.bf16.mxu0 %v3793_v0  ;;  %3311 = vmatprep.subr.bf16.mxu1 %v3793_v0 }
 0x3c9   :  { %v1572_v57 = vpop.xlane.xlu1 %1571 }
 0x3ca   :  { %3655 = vrcp.f32 %v1572_v57  ;;  %3294 = vmatpush3.bf16.msra.mxu0 %v3568_v55  ;;  %3312 = vmatpush3.bf16.msra.mxu1 %v3569_v56  ;;  %v3609_v55 = vld [vmem:[#allocation9 + $0x48] sm:$0xff]  }
 0x3cb   :  { %3295 = vmatprep.subr.bf16.mxu0 %v3793_v0  ;;  %3313 = vmatprep.subr.bf16.mxu1 %v3793_v0 }
 0x3ce   :  { %3296 = vmatpush3.bf16.msra.mxu0 %v3570_v59  ;;  %3314 = vmatpush3.bf16.msra.mxu1 %v3571_v60  ;;  %v3610_v59 = vld [vmem:[#allocation9 + $0x8] sm:$0xff]   ;;  %v3611_v60 = vld [vmem:[#allocation9 + $0x50] sm:$0xff]  }
 0x3cf   :  { %3297 = vmatprep.subr.bf16.mxu0 %v3793_v0  ;;  %3315 = vmatprep.subr.bf16.mxu1 %v3793_v0 }
 0x3d0   :  { %v3654_v62 = vpop.eup %3653 }
 0x3d1   :  { %v1590_v63 = vmul.f32 %v3654_v62, %v4201_v12  ;;  %v3582_v12 = vld [vmem:[#allocation2 + $0x120] sm:$0xff]   ;;  %v3614_v62 = vld [vmem:[#allocation9 + $0x18] sm:$0xff]  }
 0x3d2   :  { %3298 = vmatpush3.bf16.msra.mxu0 %v3572_v61  ;;  %3316 = vmatpush3.bf16.msra.mxu1 %v3573_v26  ;;  %v3612_v61 = vld [vmem:[#allocation9 + $0x10] sm:$0xff]   ;;  %v3613_v26 = vld [vmem:[#allocation9 + $0x58] sm:$0xff]  }
 0x3d3   :  { %v1603_v10 = vpack.c.bf16 %v1590_v63, %v1590_v63  ;;  %3317 = vmatprep.subr.bf16.mxu1 %v3793_v0  ;;  %3323 = vmatprep.subr.bf16.mxu0 %v3793_v0  ;;  %v3616_v63 = vld [vmem:[#allocation9 + $0x20] sm:$0xff]  }
 0x3d4   :  { %v3656_v2 = vpop.eup %3655 }
 0x3d5   :  { %3300 = vmatmul.mubr.bf16.vlgmr.msra.gmra.mrb[24].mxu0 %v1603_v10  ;;  %v1592_v3 = vmul.f32 %v3656_v2, %v4206_v14 }
 0x3d6   :  { %3318 = vmatpush3.bf16.msra.mxu1 %v3574_v1  ;;  %3324 = vmatpush3.bf16.msra.mxu0 %v3575_v58  ;;  %v3617_v1 = vld [vmem:[#allocation9 + $0x68] sm:$0xff]  }
 0x3d7   :  { %v1604_v6 = vpack.c.bf16 %v1592_v3, %v1592_v3  ;;  %3325 = vmatprep.subr.bf16.mxu0 %v3793_v0  ;;  %3343 = vmatprep.subr.bf16.mxu1 %v3793_v0 }
 0x3d8   :  { %3339 = vmatprep.mubr.msk.bf16.mxu0 %vm3794_vm0, %v3793_v0 }
 0x3d9   :  { %3320 = vmatmul.mubr.bf16.vlgmr.msra.gmra.mrb[28].mxu1 %v1604_v6 }
 0x3da   :  { %3326 = vmatpush3.bf16.msra.mxu0 %v3576_v4  ;;  %3344 = vmatpush3.bf16.msra.mxu1 %v3577_v5 }
 0x3db   :  { %3327 = vmatprep.subr.bf16.mxu0 %v3793_v0  ;;  %3345 = vmatprep.subr.bf16.mxu1 %v3793_v0 }
 0x3dc   :  { %3359 = vmatprep.mubr.msk.bf16.mxu1 %vm3794_vm0, %v3793_v0 }
 0x3de   :  { %3328 = vmatpush3.bf16.msra.mxu0 %v3578_v8  ;;  %3346 = vmatpush3.bf16.msra.mxu1 %v3579_v7 }
 0x3df   :  { %3329 = vmatprep.subr.bf16.mxu0 %v3793_v0  ;;  %3347 = vmatprep.subr.bf16.mxu1 %v3793_v0 }
 0x3e2   :  { %3330 = vmatpush3.bf16.msra.mxu0 %v3580_v9  ;;  %3348 = vmatpush3.bf16.msra.mxu1 %v3581_v11 }
 0x3e3   :  { %3331 = vmatprep.subr.bf16.mxu0 %v3793_v0  ;;  %3349 = vmatprep.subr.bf16.mxu1 %v3793_v0 }
 0x3e5   :  { %v1575_v14 = vpop.xlane.xlu0 %1574 }
 0x3e6   :  { %3657 = vrcp.f32 %v1575_v14  ;;  %3332 = vmatpush3.bf16.msra.mxu0 %v3582_v12  ;;  %3350 = vmatpush3.bf16.msra.mxu1 %v3583_v13  ;;  %v3618_v13 = vld [vmem:[#allocation9 + $0x28] sm:$0xff]  }
 0x3e7   :  { %v1578_v17 = vpop.xlane.xlu1 %1577  ;;  %3333 = vmatprep.subr.bf16.mxu0 %v3793_v0  ;;  %3351 = vmatprep.subr.bf16.mxu1 %v3793_v0 }
 0x3e8   :  { %3659 = vrcp.f32 %v1578_v17 }
 0x3ea   :  { %3334 = vmatpush3.bf16.msra.mxu0 %v3584_v15  ;;  %3352 = vmatpush3.bf16.msra.mxu1 %v3585_v16 }
 0x3eb   :  { %3335 = vmatprep.subr.bf16.mxu0 %v3793_v0  ;;  %3353 = vmatprep.subr.bf16.mxu1 %v3793_v0 }
 0x3ee   :  { %3336 = vmatpush3.bf16.msra.mxu0 %v3586_v18  ;;  %3354 = vmatpush3.bf16.msra.mxu1 %v3587_v19  ;;  %v3619_v18 = vld [vmem:[#allocation9 + $0x70] sm:$0xff]  }
 0x3ef   :  { %3337 = vmatprep.subr.bf16.mxu0 %v3793_v0  ;;  %3355 = vmatprep.subr.bf16.mxu1 %v3793_v0 }
 0x3f0   :  { %v3658_v24 = vpop.eup %3657 }
 0x3f1   :  { %v1594_v28 = vmul.f32 %v3658_v24, %v4212_v23  ;;  %v3594_v23 = vld [vmem:[#allocation2 + $0x190] sm:$0xff]  }
 0x3f2   :  { %v3660_v20 = vpop.eup %3659  ;;  %3338 = vmatpush3.bf16.msra.mxu0 %v3588_v21  ;;  %3356 = vmatpush3.bf16.msra.mxu1 %v3589_v22  ;;  %v3620_v22 = vld [vmem:[#allocation9 + $0x30] sm:$0xff]  }
 0x3f3   :  { %v1605_v25 = vpack.c.bf16 %v1594_v28, %v1594_v28  ;;  %3357 = vmatprep.subr.bf16.mxu1 %v3793_v0  ;;  %v1596_v31 = vmul.f32 %v3660_v20, %v4216_v27  ;;  %3363 = vmatprep.subr.bf16.mxu0 %v3793_v0  ;;  %v3595_v27 = vld [vmem:[#allocation2 + $0x1c8] sm:$0xff]  }
 0x3f5   :  { %3340 = vmatmul.mubr.bf16.vlgmr.msra.gmra.mrb[28].mxu0 %v1605_v25  ;;  %v1606_v34 = vpack.c.bf16 %v1596_v31, %v1596_v31 }
 0x3f6   :  { %3358 = vmatpush3.bf16.msra.mxu1 %v3590_v29  ;;  %3364 = vmatpush3.bf16.msra.mxu0 %v3591_v30  ;;  %v3621_v29 = vld [vmem:[#allocation9 + $0x78] sm:$0xff]  }
 0x3f7   :  { %3365 = vmatprep.subr.bf16.mxu0 %v3793_v0  ;;  %3383 = vmatprep.subr.bf16.mxu1 %v3793_v0  ;;  %v3622_v30 = vld [vmem:[#allocation9 + $0x38] sm:$0xff]  }
 0x3f8   :  { %3379 = vmatprep.mubr.msk.bf16.mxu0 %vm3794_vm0, %v3793_v0 }
 0x3f9   :  { %3360 = vmatmul.mubr.bf16.vlgmr.msra.gmra.mrb[32].mxu1 %v1606_v34 }
 0x3fa   :  { %3366 = vmatpush3.bf16.msra.mxu0 %v3592_v32  ;;  %3384 = vmatpush3.bf16.msra.mxu1 %v3593_v33 }
 0x3fb   :  { %3367 = vmatprep.subr.bf16.mxu0 %v3793_v0  ;;  %3385 = vmatprep.subr.bf16.mxu1 %v3793_v0 }
 0x3fc   :  { %3399 = vmatprep.mubr.msk.bf16.mxu1 %vm3794_vm0, %v3793_v0 }
 0x3fe   :  { %3368 = vmatpush3.bf16.msra.mxu0 %v3594_v23  ;;  %3386 = vmatpush3.bf16.msra.mxu1 %v3595_v27 }
 0x3ff   :  { %3369 = vmatprep.subr.bf16.mxu0 %v3793_v0  ;;  %3387 = vmatprep.subr.bf16.mxu1 %v3793_v0 }
 0x402   :  { %3370 = vmatpush3.bf16.msra.mxu0 %v3596_v35  ;;  %3388 = vmatpush3.bf16.msra.mxu1 %v3597_v36 }
 0x403   :  { %3371 = vmatprep.subr.bf16.mxu0 %v3793_v0  ;;  %3389 = vmatprep.subr.bf16.mxu1 %v3793_v0 }
 0x406   :  { %3372 = vmatpush3.bf16.msra.mxu0 %v3598_v37  ;;  %3390 = vmatpush3.bf16.msra.mxu1 %v3599_v38 }
 0x407   :  { %3373 = vmatprep.subr.bf16.mxu0 %v3793_v0  ;;  %3391 = vmatprep.subr.bf16.mxu1 %v3793_v0 }
 0x40a   :  { %3374 = vmatpush3.bf16.msra.mxu0 %v3600_v39  ;;  %3392 = vmatpush3.bf16.msra.mxu1 %v3601_v40 }
 0x40b   :  { %3375 = vmatprep.subr.bf16.mxu0 %v3793_v0  ;;  %3393 = vmatprep.subr.bf16.mxu1 %v3793_v0 }
 0x40e   :  { %3376 = vmatpush3.bf16.msra.mxu0 %v3602_v41  ;;  %3394 = vmatpush3.bf16.msra.mxu1 %v3603_v42 }
 0x40f   :  { %3377 = vmatprep.subr.bf16.mxu0 %v3793_v0  ;;  %3395 = vmatprep.subr.bf16.mxu1 %v3793_v0 }
 0x412   :  { %3378 = vmatpush3.bf16.msra.mxu0 %v3604_v43  ;;  %3396 = vmatpush3.bf16.msra.mxu1 %v3605_v45 }
 0x413   :  { %3397 = vmatprep.subr.bf16.mxu1 %v3793_v0  ;;  %3021 = vmatprep.subr.bf16.mxu0 %v3607_v50 }
 0x416   :  { %3398 = vmatpush3.bf16.msra.mxu1 %v3606_v46 }
 0x448   :  { %v1581_v47 = vpop.xlane.xlu0 %1580 }
 0x449   :  { %3661 = vrcp.f32 %v1581_v47 }
 0x44c   :  { %v1584_v49 = vpop.xlane.xlu1 %1583 }
 0x44d   :  { %3663 = vrcp.f32 %v1584_v49 }
 0x453   :  { %v3662_v51 = vpop.eup %3661 }
 0x454   :  { %v1598_v52 = vmul.f32 %v3662_v51, %v4227_v44  ;;  %v3615_v44 = vld [vmem:[#allocation9 + $0x60] sm:$0xff]  }
 0x456   :  { %v1607_v54 = vpack.c.bf16 %v1598_v52, %v1598_v52 }
 0x457   :  { %v3664_v56 = vpop.eup %3663 }
 0x458   :  { %3380 = vmatmul.mubr.bf16.vlgmr.msra.gmra.mrb[32].mxu0 %v1607_v54  ;;  %v1600_v57 = vmul.f32 %v3664_v56, %v4232_v48 }
 0x459   :  { %3022 = vmatpush3.bf16.msra.mxu0 %v3608_v53 }
 0x45a   :  { %v1608_v0 = vpack.c.bf16 %v1600_v57, %v1600_v57  ;;  %3023 = vmatprep.subr.bf16.mxu0 %v3609_v55  ;;  %v3667_v55 = vld [vmem:[%s4317_s12] sm:$0xff] }
 0x45b   :  { %v2471_v56 = vpack.c.bf16 %v3667_v55, %v3667_v55 }
 0x45c   :  { %3400 = vmatmul.mubr.bf16.vlgmr.msra.gmra.mrb[36].mxu1 %v1608_v0 }
 0x45d   :  { %3024 = vmatpush3.bf16.msra.mxu0 %v3610_v59  ;;  %v2842_v59 = vld [vmem:[%s4316_s11] ss:$0 sm:$0xff] }
 0x45e   :  { %3025 = vmatprep.subr.bf16.mxu0 %v3611_v60 }
 0x461   :  { %3026 = vmatpush3.bf16.msra.mxu0 %v3612_v61 }
 0x462   :  { %3027 = vmatprep.subr.bf16.mxu0 %v3613_v26 }
 0x465   :  { %3028 = vmatpush3.bf16.msra.mxu0 %v3614_v62 }
 0x466   :  { %3029 = vmatprep.subr.bf16.mxu0 %v3615_v44 }
 0x469   :  { %3030 = vmatpush3.bf16.msra.mxu0 %v3616_v63 }
 0x46a   :  { %3031 = vmatprep.subr.bf16.mxu0 %v3617_v1 }
 0x46d   :  { %3032 = vmatpush3.bf16.msra.mxu0 %v3618_v13 }
 0x46e   :  { %3033 = vmatprep.subr.bf16.mxu0 %v3619_v18 }
 0x471   :  { %3034 = vmatpush3.bf16.msra.mxu0 %v3620_v22 }
 0x472   :  { %3035 = vmatprep.subr.bf16.mxu0 %v3621_v29 }
 0x475   :  { %3036 = vmatpush3.bf16.msra.mxu0 %v3622_v30 }
 0x488   :  { %v1819_v48 = vpop.f32.mrb[20].mxu0 }
 0x489   :  { %v3261_v58 = vpop.f32.mrb[21].mxu0 }
 0x48a   :  { %v1822_v10 = vpop.f32.mrb[22].mxu0 }
 0x48b   :  { %v3262_v2 = vpop.f32.mrb[23].mxu0 }
 0x48c   :  { %v1907_v3 = vpop.f32.mrb[24].mxu1 }
 0x48d   :  { %v2449_v4 = vrot.slane %v1907_v3, 7  ;;  %v3281_v5 = vpop.f32.mrb[25].mxu1 }
 0x48e   :  { %v1910_v6 = vpop.f32.mrb[26].mxu1 }
 0x48f   :  { %v2451_v8 = vsel %vm2450_vm3, %v2449_v4, %v1819_v48  ;;  %v3282_v7 = vpop.f32.mrb[27].mxu1 }
 0x4a8   :  { %v1995_v9 = vpop.f32.mrb[24].mxu0 }
 0x4a9   :  { %v2452_v11 = vrot.slane %v1995_v9, 6  ;;  %v3301_v12 = vpop.f32.mrb[25].mxu0 }
 0x4aa   :  { %v1998_v14 = vpop.f32.mrb[26].mxu0 }
 0x4ab   :  { %v2454_v15 = vsel %vm2453_vm4, %v2452_v11, %v2451_v8  ;;  %v3302_v16 = vpop.f32.mrb[27].mxu0 }
 0x4ac   :  { %v2083_v17 = vpop.f32.mrb[28].mxu1 }
 0x4ad   :  { %v2455_v19 = vrot.slane %v2083_v17, 5  ;;  %v3321_v21 = vpop.f32.mrb[29].mxu1 }
 0x4ae   :  { %v2086_v24 = vpop.f32.mrb[30].mxu1 }
 0x4af   :  { %v2457_v28 = vsel %vm2456_vm5, %v2455_v19, %v2454_v15  ;;  %v3322_v20 = vpop.f32.mrb[31].mxu1 }
 0x4c8   :  { %v2171_v25 = vpop.f32.mrb[28].mxu0 }
 0x4c9   :  { %v2458_v31 = vrot.slane %v2171_v25, 4  ;;  %v3341_v32 = vpop.f32.mrb[29].mxu0 }
 0x4ca   :  { %v2174_v33 = vpop.f32.mrb[30].mxu0 }
 0x4cb   :  { %v2460_v34 = vsel %vm2459_vm6, %v2458_v31, %v2457_v28  ;;  %v3342_v23 = vpop.f32.mrb[31].mxu0 }
 0x4cc   :  { %v2259_v27 = vpop.f32.mrb[32].mxu1 }
 0x4cd   :  { %v2461_v35 = vrot.slane %v2259_v27, 3  ;;  %v3361_v36 = vpop.f32.mrb[33].mxu1 }
 0x4ce   :  { %v2262_v37 = vpop.f32.mrb[34].mxu1 }
 0x4cf   :  { %v2463_v38 = vsel %vm2462_vm7, %v2461_v35, %v2460_v34  ;;  %v3362_v39 = vpop.f32.mrb[35].mxu1 }
 0x52b   :  { %v2347_v40 = vpop.f32.mrb[32].mxu0 }
 0x52c   :  { %v2464_v41 = vrot.slane %v2347_v40, 2  ;;  %v3381_v42 = vpop.f32.mrb[33].mxu0 }
 0x52d   :  { %v2350_v43 = vpop.f32.mrb[34].mxu0 }
 0x52e   :  { %v2466_v45 = vsel %vm2465_vm8, %v2464_v41, %v2463_v38  ;;  %v3382_v46 = vpop.f32.mrb[35].mxu0 }
 0x52f   :  { %v2435_v47 = vpop.f32.mrb[36].mxu1 }
 0x530   :  { %v2467_v49 = vrot.slane %v2435_v47, 1  ;;  %v3401_v50 = vpop.f32.mrb[37].mxu1 }
 0x531   :  { %v2438_v51 = vpop.f32.mrb[38].mxu1 }
 0x532   :  { %v3402_v52 = vpop.f32.mrb[39].mxu1  ;;  %v2469_v53 = vsel %vm2468_vm9, %v2467_v49, %v2466_v45 }
 0x533   :  { %v2472_v54 = vpack.c.bf16 %v2469_v53, %v2469_v53 }
 0x535   :  { %2640 = vmatprep.mubr.bf16.mxu0 %v2472_v54 }
 0x536   :  { %2641 = vmatmul.mubr.bf16.vlgmr.msra.gmra.mrb[36].mxu0 %v2471_v56 }
 0x609   :  { %v3037_v57 = vpop.f32.mrb[36].mxu0 }
 0x60a   :  { %v3038_v0 = vpop.f32.mrb[37].mxu0 }
 0x60b   :  { %v3039_v60 = vadd.f32 %v3038_v0, %v3037_v57  ;;  %v3040_v61 = vpop.f32.mrb[38].mxu0 }
 0x60c   :  { %v3041_v26 = vpop.f32.mrb[39].mxu0 }
 0x60d   :  { %v2643_v62 = vadd.f32 %v3039_v60, %v2842_v59 }
 0x60f   :  { %3665 = vtanh.f32 %v2643_v62 }
 0x619   :  { %v3666_v44 = vpop.eup %3665 }
 0x61a   :  { %v2649_v63 = vpack.c.bf16 %v3666_v44, %v3666_v44 }
 0x61c   :  { %2650 = vst [vmem:[%s4318_s13] sm:$0xf] %v2649_v63 }
 0x61d   :  { %2659 = vsyncpa [#allocation3], 1 }
 0x61e   :  { %2660 = vsyncpa [#allocation5], 1 }
 0x61f   :  { %2661 = vsyncpa [#allocation8], 1 }

</bundles_post_ra>
